<compile_context>
chip_gen: v5e
topology: v5e:2x2
jax: 0.10.0
libtpu: 0.0.40
codegen_flags: <defaults>
</compile_context>

<pallas_src>
import jax
import jax.numpy as jnp
from jax import lax
from jax.experimental import pallas as pl
from jax.experimental.pallas import tpu as pltpu


# ----------------------------------------------------------------------------
# Small padding helpers (lane-align enc_dim / ar_dim and the 3 GRU gate blocks)
# ----------------------------------------------------------------------------
def _round_up(x, m):
    return (x + m - 1) // m * m


def _pad_axis(a, axis, new_size):
    if new_size == a.shape[axis]:
        return a
    pad = [(0, 0)] * a.ndim
    pad[axis] = (0, new_size - a.shape[axis])
    return jnp.pad(a, pad)


def _pad_gates(w, H, Hp, axis):
    """`w` holds 3 GRU gate blocks of width H along `axis`; zero-pad each to Hp."""
    if H == Hp:
        return w
    blocks = jnp.split(w, 3, axis=axis)
    return jnp.concatenate([_pad_axis(b, axis, Hp) for b in blocks], axis=axis)


# ----------------------------------------------------------------------------
# Pallas kernel: batched input projection -> batched serial GRU -> Wk -> InfoNCE
# ----------------------------------------------------------------------------
def _cpc_kernel(x_ref,      # (T, Bt, Dp)  bf16 : inp_enc tile, time-major
                y_ref,      # (Bt, T, Dp)  bf16 : outp_enc tile, batch-major
                wih_ref,    # (Dp, 3Hp)    bf16 : GRU weight_ih^T, gate-padded
                whh_ref,    # (Hp, 3Hp)    bf16 : GRU weight_hh^T, gate-padded
                bihc_ref,   # (1, 3Hp)     f32  : b_ih + [b_hr, b_hz, 0]
                bhn_ref,    # (1, Hp)      f32  : b_hn (stays inside the loop)
                wk_ref,     # (Hp, Dp)     bf16 : Wk.weight^T
                bk_ref,     # (1, Dp)      f32  : Wk.bias
                loss_ref,   # (Bt, 1)      f32  : per-sequence InfoNCE loss
                gx_ref,     # (T*Bt, 3Hp)  f32 scratch: X @ W_ih + folded bias
                h_ref):     # (T*Bt, Hp)   bf16 scratch: all GRU hidden states
    T, Bt, Dp = x_ref.shape
    Hp = whh_ref.shape[0]

    # ---- Phase 1: one dense batched input-gate matmul for all (t, b) rows.
    x2 = x_ref[...].reshape(T * Bt, Dp)                                  # bf16
    gx_ref[...] = (jnp.dot(x2, wih_ref[...],
                           preferred_element_type=jnp.float32)
                   + bihc_ref[...])                                      # (T*Bt,3Hp)

    # ---- Phase 2: serial recurrence, batched over Bt sequences per step.
    whh = whh_ref[...]                                   # loop-invariant load
    bhn = jnp.broadcast_to(bhn_ref[...], (Bt, Hp))       # hoisted broadcast

    def step(t, h):                                      # h: (Bt, Hp) f32 carry
        row = pl.multiple_of(t * Bt, Bt)
        gx = gx_ref[pl.ds(row, Bt), :]                                   # (Bt,3Hp)
        gh = jnp.dot(h.astype(jnp.bfloat16), whh,
                     preferred_element_type=jnp.float32)                 # (Bt,3Hp)
        # PyTorch nn.GRU gate order: [r, z, n]; b_hr/b_hz already folded in gx.
        r = jax.nn.sigmoid(gx[:, 0:Hp] + gh[:, 0:Hp])
        z = jax.nn.sigmoid(gx[:, Hp:2 * Hp] + gh[:, Hp:2 * Hp])
        n = jnp.tanh(gx[:, 2 * Hp:3 * Hp] + r * (gh[:, 2 * Hp:3 * Hp] + bhn))
        h_new = (1.0 - z) * n + z * h                                    # (Bt,Hp)
        h_ref[pl.ds(row, Bt), :] = h_new.astype(jnp.bfloat16)
        return h_new

    h0 = jnp.zeros((Bt, Hp), dtype=jnp.float32)
    lax.fori_loop(0, T, step, h0, unroll=(T if T <= 16 else 8))

    # ---- Phase 3: batched Wk projection + per-sequence InfoNCE.
    h_bt = (h_ref[...].reshape(T, Bt, Hp)
            .transpose(1, 0, 2).reshape(Bt * T, Hp))                     # bf16
    pred = (jnp.dot(h_bt, wk_ref[...], preferred_element_type=jnp.float32)
            + bk_ref[...])                                               # (Bt*T,Dp)
    predb = pred.reshape(Bt, T, Dp)                                      # f32
    tgtb = y_ref[...]                                                    # bf16

    logits = jnp.einsum('bqd,bkd->bqk', predb.astype(jnp.bfloat16), tgtb,
                        preferred_element_type=jnp.float32)              # (Bt,T,T)
    m = jnp.max(logits, axis=-1, keepdims=True)                          # (Bt,T,1)
    lse = m + jnp.log(jnp.sum(jnp.exp(logits - m), axis=-1, keepdims=True))
    diag = jnp.sum(predb * tgtb.astype(jnp.float32), axis=-1,
                   keepdims=True)                                        # (Bt,T,1)
    loss_ref[...] = jnp.mean(lse - diag, axis=1)                         # (Bt,1)


# ----------------------------------------------------------------------------
# Wrapper: reshape, k-shift, weight packing/padding, batch tiling, pallas_call
# ----------------------------------------------------------------------------
def _choose_batch_tile(B):
    for bt in (32, 24, 16, 8):
        if B % bt == 0:
            return bt
    return B   # fall back: whole batch in a single kernel invocation


def _chip_vmem_bytes():
    try:
        cap = getattr(pltpu.get_tpu_info(), "vmem_capacity_bytes", None)
        if cap:
            return int(cap)
    except Exception:
        pass
    return 64 * 1024 * 1024   # conservative: v7x has 64 MiB per TensorCore


def cpc_forward(enc, params, *, k=1, reshape_before_ar=1, batch_tile=None):
    """enc: (num_sentences, enc_dim) float32 encoder outputs."""
    n_sent, enc_dim = enc.shape
    assert n_sent % reshape_before_ar == 0, \
        "num_sentences must be divisible by reshape_before_ar"
    B = reshape_before_ar
    enc3 = enc.reshape(B, -1, enc_dim)
    assert enc3.shape[1] > k, "need more than k sentences per sequence"
    inp_enc, outp_enc = enc3[:, :-k], enc3[:, k:]          # (B, T, D)
    T = inp_enc.shape[1]
    D = enc_dim
    H = params["gru_w_hh"].shape[1]
    Dp, Hp = _round_up(D, 128), _round_up(H, 128)

    if batch_tile is None:
        batch_tile = _choose_batch_tile(B)
    Bt = batch_tile
    assert B % Bt == 0, "batch_tile must divide reshape_before_ar"
    assert Bt % 8 == 0 or Bt == B, "batch_tile must be a multiple of 8 (or == B)"

    # ---- weights: transpose, fold r/z halves of b_hh into b_ih, pad gate
    # ---- blocks to 128 lanes, cast matmul operands to bf16 (f32 MXU acc).
    wih_t = _pad_gates(_pad_axis(params["gru_w_ih"].T, 0, Dp),
                       H, Hp, 1).astype(jnp.bfloat16)                 # (Dp, 3Hp)
    whh_t = _pad_gates(_pad_axis(params["gru_w_hh"].T, 0, Hp),
                       H, Hp, 1).astype(jnp.bfloat16)                 # (Hp, 3Hp)
    b_comb = (params["gru_b_ih"]
              + jnp.concatenate([params["gru_b_hh"][:2 * H],
                                 jnp.zeros((H,), jnp.float32)]))
    bihc = _pad_gates(b_comb[None, :], H, Hp, 1).astype(jnp.float32)  # (1, 3Hp)
    bhn = _pad_axis(params["gru_b_hh"][None, 2 * H:], 1,
                    Hp).astype(jnp.float32)                           # (1, Hp)
    wk_t = _pad_axis(_pad_axis(params["wk_w"].T, 0, Hp), 1,
                     Dp).astype(jnp.bfloat16)                         # (Hp, Dp)
    bk_p = _pad_axis(params["wk_b"][None, :], 1, Dp).astype(jnp.float32)  # (1, Dp)

    # ---- inputs: pad D to 128, cast to bf16 (halves the per-step DMA bytes).
    x = _pad_axis(inp_enc, 2, Dp).astype(jnp.bfloat16).transpose(1, 0, 2)  # (T,B,Dp)
    y = _pad_axis(outp_enc, 2, Dp).astype(jnp.bfloat16)                    # (B,T,Dp)

    # ---- scoped-VMEM budget, capped by the actual chip VMEM capacity.
    weight_bytes = ((wih_t.size + whh_t.size + wk_t.size) * 2
                    + (bihc.size + bhn.size + bk_p.size) * 4)
    io_bytes = 2 * 2 * T * Bt * Dp * 2                 # x & y blocks, double-buffered
    scratch_bytes = T * Bt * (3 * Hp * 4 + Hp * 2)     # gx (f32) + h_all (bf16)
    tmp_bytes = 3 * T * Bt * Dp * 4 + 2 * Bt * T * T * 4 + T * Bt * Hp * 2
    needed = weight_bytes + io_bytes + scratch_bytes + tmp_bytes
    vmem_limit = min(max(int(1.5 * needed), 8 * 1024 * 1024),
                     int(0.75 * _chip_vmem_bytes()))

    vmem_full = pl.BlockSpec(memory_space=pltpu.MemorySpace.VMEM)

    losses = pl.pallas_call(
        _cpc_kernel,
        out_shape=jax.ShapeDtypeStruct((B, 1), jnp.float32),
        grid=(B // Bt,),
        in_specs=[
            pl.BlockSpec((T, Bt, Dp), lambda b: (0, b, 0)),   # x tile (time-major)
            pl.BlockSpec((Bt, T, Dp), lambda b: (b, 0, 0)),   # y tile (batch-major)
            vmem_full,   # wih_t
            vmem_full,   # whh_t
            vmem_full,   # bihc
            vmem_full,   # bhn
            vmem_full,   # wk_t
            vmem_full,   # bk_p
        ],
        out_specs=pl.BlockSpec((Bt, 1), lambda b: (b, 0)),
        scratch_shapes=[
            pltpu.VMEM((T * Bt, 3 * Hp), jnp.float32),   # gx_all
            pltpu.VMEM((T * Bt, Hp), jnp.bfloat16),      # h_all
        ],
        compiler_params=pltpu.CompilerParams(
            dimension_semantics=("parallel",),
            vmem_limit_bytes=int(vmem_limit)),
    )(x, y, wih_t, whh_t, bihc, bhn, wk_t, bk_p)

    return jnp.mean(losses)


# ----------------------------------------------------------------------------
# Deterministic parameter init (shapes from nn.GRU / nn.Linear in the module)
# ----------------------------------------------------------------------------
def init_params(key, enc_dim, ar_dim):
    ks = jax.random.split(key, 6)
    s = 1.0 / jnp.sqrt(ar_dim)
    u = lambda k, shape: jax.random.uniform(k, shape, jnp.float32, -s, s)
    return {
        "gru_w_ih": u(ks[0], (3 * ar_dim, enc_dim)),
        "gru_w_hh": u(ks[1], (3 * ar_dim, ar_dim)),
        "gru_b_ih": u(ks[2], (3 * ar_dim,)),
        "gru_b_hh": u(ks[3], (3 * ar_dim,)),
        "wk_w":     u(ks[4], (enc_dim, ar_dim)),
        "wk_b":     u(ks[5], (enc_dim,)),
    }


if __name__ == "__main__":
    ENC_DIM = 128        # small stand-in for enc_dim=2400
    AR_DIM = 128         # small stand-in for ar_dim=2400
    RESHAPE_B = 16       # sequences fed to the (batched) GRU
    SENT_PER_SEQ = 9     # with k=1 -> T=8 GRU steps per sequence
    NUM_SENT = RESHAPE_B * SENT_PER_SEQ
    K = 1

    key = jax.random.PRNGKey(0)
    k_enc, k_par = jax.random.split(key)
    # Encoder outputs: sequences x enc_dim (see TODO(synk) about PaperEncoder).
    enc = jax.random.normal(k_enc, (NUM_SENT, ENC_DIM), jnp.float32)
    params = init_params(k_par, ENC_DIM, AR_DIM)

    # batch_tile=8 -> grid=(2,) parallel batch tiles; each recurrence step is an
    # (8,H)@(H,3H) MXU matmul instead of a matvec.
    loss = cpc_forward(enc, params, k=K, reshape_before_ar=RESHAPE_B,
                       batch_tile=8)
    jax.block_until_ready(loss)
    assert jnp.isfinite(loss)
    print("KERNEL_OK")
</pallas_src>

<mosaic_0001>
module attributes {stable_mosaic.version = 11 : i64} {
  func.func @_cpc_kernel(%arg0: i32, %arg1: memref<8x8x128xbf16, #tpu.memory_space<vmem>>, %arg2: memref<8x8x128xbf16, #tpu.memory_space<vmem>>, %arg3: memref<128x384xbf16, #tpu.memory_space<vmem>>, %arg4: memref<128x384xbf16, #tpu.memory_space<vmem>>, %arg5: memref<1x384xf32, #tpu.memory_space<vmem>>, %arg6: memref<1x128xf32, #tpu.memory_space<vmem>>, %arg7: memref<128x128xbf16, #tpu.memory_space<vmem>>, %arg8: memref<1x128xf32, #tpu.memory_space<vmem>>, %arg9: memref<8x1xf32, #tpu.memory_space<vmem>>, %arg10: memref<64x384xf32, #tpu.memory_space<vmem>>, %arg11: memref<64x128xbf16, #tpu.memory_space<vmem>>) attributes {dimension_semantics = [#tpu.dimension_semantics<parallel>], iteration_bounds = array<i64: 2>, scalar_prefetch = 0 : i64, scratch_operands = 2 : i64, tpu.core_type = #tpu.core_type<tc>, window_params = [{transform_indices = @transform_0, window_bounds = array<i64: 8, 8, 128>}, {transform_indices = @transform_1, window_bounds = array<i64: 8, 8, 128>}, {pipeline_mode = #tpu.pipeline_mode<synchronous>, transform_indices = @transform_2, window_bounds = array<i64: 128, 384>}, {pipeline_mode = #tpu.pipeline_mode<synchronous>, transform_indices = @transform_3, window_bounds = array<i64: 128, 384>}, {pipeline_mode = #tpu.pipeline_mode<synchronous>, transform_indices = @transform_4, window_bounds = array<i64: 1, 384>}, {pipeline_mode = #tpu.pipeline_mode<synchronous>, transform_indices = @transform_5, window_bounds = array<i64: 1, 128>}, {pipeline_mode = #tpu.pipeline_mode<synchronous>, transform_indices = @transform_6, window_bounds = array<i64: 128, 128>}, {pipeline_mode = #tpu.pipeline_mode<synchronous>, transform_indices = @transform_7, window_bounds = array<i64: 1, 128>}, {transform_indices = @transform_8, window_bounds = array<i64: 8, 1>}]} {
    %c0 = arith.constant 0 : index
    %c0_0 = arith.constant 0 : index
    %c0_1 = arith.constant 0 : index
    %0 = vector.load %arg1[%c0, %c0_0, %c0_1] : memref<8x8x128xbf16, #tpu.memory_space<vmem>>, vector<8x8x128xbf16>
    %1 = vector.shape_cast %0 : vector<8x8x128xbf16> to vector<64x128xbf16>
    %c0_2 = arith.constant 0 : index
    %c0_3 = arith.constant 0 : index
    %2 = vector.load %arg3[%c0_2, %c0_3] : memref<128x384xbf16, #tpu.memory_space<vmem>>, vector<128x384xbf16>
    %cst = arith.constant dense<0.000000e+00> : vector<64x384xf32>
    %3 = tpu.matmul %1, %2, %cst {dimension_numbers = #tpu.dot_dimension_numbers<[1], [0], [0], [1], [0, 0, 1, 1], [], []>} : vector<64x128xbf16>, vector<128x384xbf16>, vector<64x384xf32> -> vector<64x384xf32>
    %c0_4 = arith.constant 0 : index
    %c0_5 = arith.constant 0 : index
    %4 = vector.load %arg5[%c0_4, %c0_5] : memref<1x384xf32, #tpu.memory_space<vmem>>, vector<1x384xf32>
    %5 = vector.broadcast %4 : vector<1x384xf32> to vector<64x384xf32>
    %6 = arith.addf %3, %5 : vector<64x384xf32>
    %c0_6 = arith.constant 0 : index
    %c0_7 = arith.constant 0 : index
    %7 = vector.load %arg10[%c0_6, %c0_7] : memref<64x384xf32, #tpu.memory_space<vmem>>, vector<64x384xf32>
    tpu.vector_store %arg10[%c0_6, %c0_7], %6 {strides = array<i32>} : memref<64x384xf32, #tpu.memory_space<vmem>>, vector<64x384xf32>,
    %c0_8 = arith.constant 0 : index
    %c0_9 = arith.constant 0 : index
    %8 = vector.load %arg4[%c0_8, %c0_9] : memref<128x384xbf16, #tpu.memory_space<vmem>>, vector<128x384xbf16>
    %c0_10 = arith.constant 0 : index
    %c0_11 = arith.constant 0 : index
    %9 = vector.load %arg6[%c0_10, %c0_11] : memref<1x128xf32, #tpu.memory_space<vmem>>, vector<1x128xf32>
    %10 = vector.shape_cast %9 : vector<1x128xf32> to vector<1x128xf32>
    %11 = vector.broadcast %10 : vector<1x128xf32> to vector<8x128xf32>
    %cst_12 = arith.constant 0.000000e+00 : f32
    %12 = vector.broadcast %cst_12 : f32 to vector<8x128xf32>
    %c0_i32 = arith.constant 0 : i32
    %c8_i32 = arith.constant 8 : i32
    %13 = arith.muli %c0_i32, %c8_i32 : i32
    %14 = tpu.assume_multiple %13, 8 : i32
    %15 = arith.index_cast %14 : i32 to index
    %c0_13 = arith.constant 0 : index
    %16 = vector.load %arg10[%15, %c0_13] : memref<64x384xf32, #tpu.memory_space<vmem>>, vector<8x384xf32>
    %17 = arith.truncf %12 : vector<8x128xf32> to vector<8x128xbf16>
    %cst_14 = arith.constant dense<0.000000e+00> : vector<8x384xf32>
    %18 = tpu.matmul %17, %8, %cst_14 {dimension_numbers = #tpu.dot_dimension_numbers<[1], [0], [0], [1], [0, 0, 1, 1], [], []>} : vector<8x128xbf16>, vector<128x384xbf16>, vector<8x384xf32> -> vector<8x384xf32>
    %19 = vector.extract_strided_slice %16 {offsets = [0, 0], sizes = [8, 128], strides = [1, 1]} : vector<8x384xf32> to vector<8x128xf32>
    %20 = vector.extract_strided_slice %18 {offsets = [0, 0], sizes = [8, 128], strides = [1, 1]} : vector<8x384xf32> to vector<8x128xf32>
    %21 = arith.addf %19, %20 : vector<8x128xf32>
    %22 = arith.negf %21 : vector<8x128xf32>
    %23 = math.exp %22 : vector<8x128xf32>
    %cst_15 = arith.constant 1.000000e+00 : f32
    %24 = vector.broadcast %cst_15 : f32 to vector<8x128xf32>
    %25 = arith.addf %24, %23 : vector<8x128xf32>
    %26 = arith.divf %24, %25 : vector<8x128xf32>
    %27 = vector.extract_strided_slice %16 {offsets = [0, 128], sizes = [8, 128], strides = [1, 1]} : vector<8x384xf32> to vector<8x128xf32>
    %28 = vector.extract_strided_slice %18 {offsets = [0, 128], sizes = [8, 128], strides = [1, 1]} : vector<8x384xf32> to vector<8x128xf32>
    %29 = arith.addf %27, %28 : vector<8x128xf32>
    %30 = arith.negf %29 : vector<8x128xf32>
    %31 = math.exp %30 : vector<8x128xf32>
    %cst_16 = arith.constant 1.000000e+00 : f32
    %32 = vector.broadcast %cst_16 : f32 to vector<8x128xf32>
    %33 = arith.addf %32, %31 : vector<8x128xf32>
    %34 = arith.divf %32, %33 : vector<8x128xf32>
    %35 = vector.extract_strided_slice %16 {offsets = [0, 256], sizes = [8, 128], strides = [1, 1]} : vector<8x384xf32> to vector<8x128xf32>
    %36 = vector.extract_strided_slice %18 {offsets = [0, 256], sizes = [8, 128], strides = [1, 1]} : vector<8x384xf32> to vector<8x128xf32>
    %37 = arith.addf %36, %11 : vector<8x128xf32>
    %38 = arith.mulf %26, %37 : vector<8x128xf32>
    %39 = arith.addf %35, %38 : vector<8x128xf32>
    %40 = math.tanh %39 : vector<8x128xf32>
    %cst_17 = arith.constant 1.000000e+00 : f32
    %41 = vector.broadcast %cst_17 : f32 to vector<8x128xf32>
    %42 = arith.subf %41, %34 : vector<8x128xf32>
    %43 = arith.mulf %42, %40 : vector<8x128xf32>
    %44 = arith.mulf %34, %12 : vector<8x128xf32>
    %45 = arith.addf %43, %44 : vector<8x128xf32>
    %46 = arith.truncf %45 : vector<8x128xf32> to vector<8x128xbf16>
    %47 = arith.index_cast %14 : i32 to index
    %c0_18 = arith.constant 0 : index
    %48 = vector.load %arg11[%47, %c0_18] : memref<64x128xbf16, #tpu.memory_space<vmem>>, vector<8x128xbf16>
    tpu.vector_store %arg11[%47, %c0_18], %46 {strides = array<i32>} : memref<64x128xbf16, #tpu.memory_space<vmem>>, vector<8x128xbf16>,
    %c1_i32 = arith.constant 1 : i32
    %c8_i32_19 = arith.constant 8 : i32
    %49 = arith.muli %c1_i32, %c8_i32_19 : i32
    %50 = tpu.assume_multiple %49, 8 : i32
    %51 = arith.index_cast %50 : i32 to index
    %c0_20 = arith.constant 0 : index
    %52 = vector.load %arg10[%51, %c0_20] : memref<64x384xf32, #tpu.memory_space<vmem>>, vector<8x384xf32>
    %53 = arith.truncf %45 : vector<8x128xf32> to vector<8x128xbf16>
    %cst_21 = arith.constant dense<0.000000e+00> : vector<8x384xf32>
    %54 = tpu.matmul %53, %8, %cst_21 {dimension_numbers = #tpu.dot_dimension_numbers<[1], [0], [0], [1], [0, 0, 1, 1], [], []>} : vector<8x128xbf16>, vector<128x384xbf16>, vector<8x384xf32> -> vector<8x384xf32>
    %55 = vector.extract_strided_slice %52 {offsets = [0, 0], sizes = [8, 128], strides = [1, 1]} : vector<8x384xf32> to vector<8x128xf32>
    %56 = vector.extract_strided_slice %54 {offsets = [0, 0], sizes = [8, 128], strides = [1, 1]} : vector<8x384xf32> to vector<8x128xf32>
    %57 = arith.addf %55, %56 : vector<8x128xf32>
    %58 = arith.negf %57 : vector<8x128xf32>
    %59 = math.exp %58 : vector<8x128xf32>
    %cst_22 = arith.constant 1.000000e+00 : f32
    %60 = vector.broadcast %cst_22 : f32 to vector<8x128xf32>
    %61 = arith.addf %60, %59 : vector<8x128xf32>
    %62 = arith.divf %60, %61 : vector<8x128xf32>
    %63 = vector.extract_strided_slice %52 {offsets = [0, 128], sizes = [8, 128], strides = [1, 1]} : vector<8x384xf32> to vector<8x128xf32>
    %64 = vector.extract_strided_slice %54 {offsets = [0, 128], sizes = [8, 128], strides = [1, 1]} : vector<8x384xf32> to vector<8x128xf32>
    %65 = arith.addf %63, %64 : vector<8x128xf32>
    %66 = arith.negf %65 : vector<8x128xf32>
    %67 = math.exp %66 : vector<8x128xf32>
    %cst_23 = arith.constant 1.000000e+00 : f32
    %68 = vector.broadcast %cst_23 : f32 to vector<8x128xf32>
    %69 = arith.addf %68, %67 : vector<8x128xf32>
    %70 = arith.divf %68, %69 : vector<8x128xf32>
    %71 = vector.extract_strided_slice %52 {offsets = [0, 256], sizes = [8, 128], strides = [1, 1]} : vector<8x384xf32> to vector<8x128xf32>
    %72 = vector.extract_strided_slice %54 {offsets = [0, 256], sizes = [8, 128], strides = [1, 1]} : vector<8x384xf32> to vector<8x128xf32>
    %73 = arith.addf %72, %11 : vector<8x128xf32>
    %74 = arith.mulf %62, %73 : vector<8x128xf32>
    %75 = arith.addf %71, %74 : vector<8x128xf32>
    %76 = math.tanh %75 : vector<8x128xf32>
    %cst_24 = arith.constant 1.000000e+00 : f32
    %77 = vector.broadcast %cst_24 : f32 to vector<8x128xf32>
    %78 = arith.subf %77, %70 : vector<8x128xf32>
    %79 = arith.mulf %78, %76 : vector<8x128xf32>
    %80 = arith.mulf %70, %45 : vector<8x128xf32>
    %81 = arith.addf %79, %80 : vector<8x128xf32>
    %82 = arith.truncf %81 : vector<8x128xf32> to vector<8x128xbf16>
    %83 = arith.index_cast %50 : i32 to index
    %c0_25 = arith.constant 0 : index
    %84 = vector.load %arg11[%83, %c0_25] : memref<64x128xbf16, #tpu.memory_space<vmem>>, vector<8x128xbf16>
    tpu.vector_store %arg11[%83, %c0_25], %82 {strides = array<i32>} : memref<64x128xbf16, #tpu.memory_space<vmem>>, vector<8x128xbf16>,
    %c2_i32 = arith.constant 2 : i32
    %c8_i32_26 = arith.constant 8 : i32
    %85 = arith.muli %c2_i32, %c8_i32_26 : i32
    %86 = tpu.assume_multiple %85, 8 : i32
    %87 = arith.index_cast %86 : i32 to index
    %c0_27 = arith.constant 0 : index
    %88 = vector.load %arg10[%87, %c0_27] : memref<64x384xf32, #tpu.memory_space<vmem>>, vector<8x384xf32>
    %89 = arith.truncf %81 : vector<8x128xf32> to vector<8x128xbf16>
    %cst_28 = arith.constant dense<0.000000e+00> : vector<8x384xf32>
    %90 = tpu.matmul %89, %8, %cst_28 {dimension_numbers = #tpu.dot_dimension_numbers<[1], [0], [0], [1], [0, 0, 1, 1], [], []>} : vector<8x128xbf16>, vector<128x384xbf16>, vector<8x384xf32> -> vector<8x384xf32>
    %91 = vector.extract_strided_slice %88 {offsets = [0, 0], sizes = [8, 128], strides = [1, 1]} : vector<8x384xf32> to vector<8x128xf32>
    %92 = vector.extract_strided_slice %90 {offsets = [0, 0], sizes = [8, 128], strides = [1, 1]} : vector<8x384xf32> to vector<8x128xf32>
    %93 = arith.addf %91, %92 : vector<8x128xf32>
    %94 = arith.negf %93 : vector<8x128xf32>
    %95 = math.exp %94 : vector<8x128xf32>
    %cst_29 = arith.constant 1.000000e+00 : f32
    %96 = vector.broadcast %cst_29 : f32 to vector<8x128xf32>
    %97 = arith.addf %96, %95 : vector<8x128xf32>
    %98 = arith.divf %96, %97 : vector<8x128xf32>
    %99 = vector.extract_strided_slice %88 {offsets = [0, 128], sizes = [8, 128], strides = [1, 1]} : vector<8x384xf32> to vector<8x128xf32>
    %100 = vector.extract_strided_slice %90 {offsets = [0, 128], sizes = [8, 128], strides = [1, 1]} : vector<8x384xf32> to vector<8x128xf32>
    %101 = arith.addf %99, %100 : vector<8x128xf32>
    %102 = arith.negf %101 : vector<8x128xf32>
    %103 = math.exp %102 : vector<8x128xf32>
    %cst_30 = arith.constant 1.000000e+00 : f32
    %104 = vector.broadcast %cst_30 : f32 to vector<8x128xf32>
    %105 = arith.addf %104, %103 : vector<8x128xf32>
    %106 = arith.divf %104, %105 : vector<8x128xf32>
    %107 = vector.extract_strided_slice %88 {offsets = [0, 256], sizes = [8, 128], strides = [1, 1]} : vector<8x384xf32> to vector<8x128xf32>
    %108 = vector.extract_strided_slice %90 {offsets = [0, 256], sizes = [8, 128], strides = [1, 1]} : vector<8x384xf32> to vector<8x128xf32>
    %109 = arith.addf %108, %11 : vector<8x128xf32>
    %110 = arith.mulf %98, %109 : vector<8x128xf32>
    %111 = arith.addf %107, %110 : vector<8x128xf32>
    %112 = math.tanh %111 : vector<8x128xf32>
    %cst_31 = arith.constant 1.000000e+00 : f32
    %113 = vector.broadcast %cst_31 : f32 to vector<8x128xf32>
    %114 = arith.subf %113, %106 : vector<8x128xf32>
    %115 = arith.mulf %114, %112 : vector<8x128xf32>
    %116 = arith.mulf %106, %81 : vector<8x128xf32>
    %117 = arith.addf %115, %116 : vector<8x128xf32>
    %118 = arith.truncf %117 : vector<8x128xf32> to vector<8x128xbf16>
    %119 = arith.index_cast %86 : i32 to index
    %c0_32 = arith.constant 0 : index
    %120 = vector.load %arg11[%119, %c0_32] : memref<64x128xbf16, #tpu.memory_space<vmem>>, vector<8x128xbf16>
    tpu.vector_store %arg11[%119, %c0_32], %118 {strides = array<i32>} : memref<64x128xbf16, #tpu.memory_space<vmem>>, vector<8x128xbf16>,
    %c3_i32 = arith.constant 3 : i32
    %c8_i32_33 = arith.constant 8 : i32
    %121 = arith.muli %c3_i32, %c8_i32_33 : i32
    %122 = tpu.assume_multiple %121, 8 : i32
    %123 = arith.index_cast %122 : i32 to index
    %c0_34 = arith.constant 0 : index
    %124 = vector.load %arg10[%123, %c0_34] : memref<64x384xf32, #tpu.memory_space<vmem>>, vector<8x384xf32>
    %125 = arith.truncf %117 : vector<8x128xf32> to vector<8x128xbf16>
    %cst_35 = arith.constant dense<0.000000e+00> : vector<8x384xf32>
    %126 = tpu.matmul %125, %8, %cst_35 {dimension_numbers = #tpu.dot_dimension_numbers<[1], [0], [0], [1], [0, 0, 1, 1], [], []>} : vector<8x128xbf16>, vector<128x384xbf16>, vector<8x384xf32> -> vector<8x384xf32>
    %127 = vector.extract_strided_slice %124 {offsets = [0, 0], sizes = [8, 128], strides = [1, 1]} : vector<8x384xf32> to vector<8x128xf32>
    %128 = vector.extract_strided_slice %126 {offsets = [0, 0], sizes = [8, 128], strides = [1, 1]} : vector<8x384xf32> to vector<8x128xf32>
    %129 = arith.addf %127, %128 : vector<8x128xf32>
    %130 = arith.negf %129 : vector<8x128xf32>
    %131 = math.exp %130 : vector<8x128xf32>
    %cst_36 = arith.constant 1.000000e+00 : f32
    %132 = vector.broadcast %cst_36 : f32 to vector<8x128xf32>
    %133 = arith.addf %132, %131 : vector<8x128xf32>
    %134 = arith.divf %132, %133 : vector<8x128xf32>
    %135 = vector.extract_strided_slice %124 {offsets = [0, 128], sizes = [8, 128], strides = [1, 1]} : vector<8x384xf32> to vector<8x128xf32>
    %136 = vector.extract_strided_slice %126 {offsets = [0, 128], sizes = [8, 128], strides = [1, 1]} : vector<8x384xf32> to vector<8x128xf32>
    %137 = arith.addf %135, %136 : vector<8x128xf32>
    %138 = arith.negf %137 : vector<8x128xf32>
    %139 = math.exp %138 : vector<8x128xf32>
    %cst_37 = arith.constant 1.000000e+00 : f32
    %140 = vector.broadcast %cst_37 : f32 to vector<8x128xf32>
    %141 = arith.addf %140, %139 : vector<8x128xf32>
    %142 = arith.divf %140, %141 : vector<8x128xf32>
    %143 = vector.extract_strided_slice %124 {offsets = [0, 256], sizes = [8, 128], strides = [1, 1]} : vector<8x384xf32> to vector<8x128xf32>
    %144 = vector.extract_strided_slice %126 {offsets = [0, 256], sizes = [8, 128], strides = [1, 1]} : vector<8x384xf32> to vector<8x128xf32>
    %145 = arith.addf %144, %11 : vector<8x128xf32>
    %146 = arith.mulf %134, %145 : vector<8x128xf32>
    %147 = arith.addf %143, %146 : vector<8x128xf32>
    %148 = math.tanh %147 : vector<8x128xf32>
    %cst_38 = arith.constant 1.000000e+00 : f32
    %149 = vector.broadcast %cst_38 : f32 to vector<8x128xf32>
    %150 = arith.subf %149, %142 : vector<8x128xf32>
    %151 = arith.mulf %150, %148 : vector<8x128xf32>
    %152 = arith.mulf %142, %117 : vector<8x128xf32>
    %153 = arith.addf %151, %152 : vector<8x128xf32>
    %154 = arith.truncf %153 : vector<8x128xf32> to vector<8x128xbf16>
    %155 = arith.index_cast %122 : i32 to index
    %c0_39 = arith.constant 0 : index
    %156 = vector.load %arg11[%155, %c0_39] : memref<64x128xbf16, #tpu.memory_space<vmem>>, vector<8x128xbf16>
    tpu.vector_store %arg11[%155, %c0_39], %154 {strides = array<i32>} : memref<64x128xbf16, #tpu.memory_space<vmem>>, vector<8x128xbf16>,
    %c4_i32 = arith.constant 4 : i32
    %c8_i32_40 = arith.constant 8 : i32
    %157 = arith.muli %c4_i32, %c8_i32_40 : i32
    %158 = tpu.assume_multiple %157, 8 : i32
    %159 = arith.index_cast %158 : i32 to index
    %c0_41 = arith.constant 0 : index
    %160 = vector.load %arg10[%159, %c0_41] : memref<64x384xf32, #tpu.memory_space<vmem>>, vector<8x384xf32>
    %161 = arith.truncf %153 : vector<8x128xf32> to vector<8x128xbf16>
    %cst_42 = arith.constant dense<0.000000e+00> : vector<8x384xf32>
    %162 = tpu.matmul %161, %8, %cst_42 {dimension_numbers = #tpu.dot_dimension_numbers<[1], [0], [0], [1], [0, 0, 1, 1], [], []>} : vector<8x128xbf16>, vector<128x384xbf16>, vector<8x384xf32> -> vector<8x384xf32>
    %163 = vector.extract_strided_slice %160 {offsets = [0, 0], sizes = [8, 128], strides = [1, 1]} : vector<8x384xf32> to vector<8x128xf32>
    %164 = vector.extract_strided_slice %162 {offsets = [0, 0], sizes = [8, 128], strides = [1, 1]} : vector<8x384xf32> to vector<8x128xf32>
    %165 = arith.addf %163, %164 : vector<8x128xf32>
    %166 = arith.negf %165 : vector<8x128xf32>
    %167 = math.exp %166 : vector<8x128xf32>
    %cst_43 = arith.constant 1.000000e+00 : f32
    %168 = vector.broadcast %cst_43 : f32 to vector<8x128xf32>
    %169 = arith.addf %168, %167 : vector<8x128xf32>
    %170 = arith.divf %168, %169 : vector<8x128xf32>
    %171 = vector.extract_strided_slice %160 {offsets = [0, 128], sizes = [8, 128], strides = [1, 1]} : vector<8x384xf32> to vector<8x128xf32>
    %172 = vector.extract_strided_slice %162 {offsets = [0, 128], sizes = [8, 128], strides = [1, 1]} : vector<8x384xf32> to vector<8x128xf32>
    %173 = arith.addf %171, %172 : vector<8x128xf32>
    %174 = arith.negf %173 : vector<8x128xf32>
    %175 = math.exp %174 : vector<8x128xf32>
    %cst_44 = arith.constant 1.000000e+00 : f32
    %176 = vector.broadcast %cst_44 : f32 to vector<8x128xf32>
    %177 = arith.addf %176, %175 : vector<8x128xf32>
    %178 = arith.divf %176, %177 : vector<8x128xf32>
    %179 = vector.extract_strided_slice %160 {offsets = [0, 256], sizes = [8, 128], strides = [1, 1]} : vector<8x384xf32> to vector<8x128xf32>
    %180 = vector.extract_strided_slice %162 {offsets = [0, 256], sizes = [8, 128], strides = [1, 1]} : vector<8x384xf32> to vector<8x128xf32>
    %181 = arith.addf %180, %11 : vector<8x128xf32>
    %182 = arith.mulf %170, %181 : vector<8x128xf32>
    %183 = arith.addf %179, %182 : vector<8x128xf32>
    %184 = math.tanh %183 : vector<8x128xf32>
    %cst_45 = arith.constant 1.000000e+00 : f32
    %185 = vector.broadcast %cst_45 : f32 to vector<8x128xf32>
    %186 = arith.subf %185, %178 : vector<8x128xf32>
    %187 = arith.mulf %186, %184 : vector<8x128xf32>
    %188 = arith.mulf %178, %153 : vector<8x128xf32>
    %189 = arith.addf %187, %188 : vector<8x128xf32>
    %190 = arith.truncf %189 : vector<8x128xf32> to vector<8x128xbf16>
    %191 = arith.index_cast %158 : i32 to index
    %c0_46 = arith.constant 0 : index
    %192 = vector.load %arg11[%191, %c0_46] : memref<64x128xbf16, #tpu.memory_space<vmem>>, vector<8x128xbf16>
    tpu.vector_store %arg11[%191, %c0_46], %190 {strides = array<i32>} : memref<64x128xbf16, #tpu.memory_space<vmem>>, vector<8x128xbf16>,
    %c5_i32 = arith.constant 5 : i32
    %c8_i32_47 = arith.constant 8 : i32
    %193 = arith.muli %c5_i32, %c8_i32_47 : i32
    %194 = tpu.assume_multiple %193, 8 : i32
    %195 = arith.index_cast %194 : i32 to index
    %c0_48 = arith.constant 0 : index
    %196 = vector.load %arg10[%195, %c0_48] : memref<64x384xf32, #tpu.memory_space<vmem>>, vector<8x384xf32>
    %197 = arith.truncf %189 : vector<8x128xf32> to vector<8x128xbf16>
    %cst_49 = arith.constant dense<0.000000e+00> : vector<8x384xf32>
    %198 = tpu.matmul %197, %8, %cst_49 {dimension_numbers = #tpu.dot_dimension_numbers<[1], [0], [0], [1], [0, 0, 1, 1], [], []>} : vector<8x128xbf16>, vector<128x384xbf16>, vector<8x384xf32> -> vector<8x384xf32>
    %199 = vector.extract_strided_slice %196 {offsets = [0, 0], sizes = [8, 128], strides = [1, 1]} : vector<8x384xf32> to vector<8x128xf32>
    %200 = vector.extract_strided_slice %198 {offsets = [0, 0], sizes = [8, 128], strides = [1, 1]} : vector<8x384xf32> to vector<8x128xf32>
    %201 = arith.addf %199, %200 : vector<8x128xf32>
    %202 = arith.negf %201 : vector<8x128xf32>
    %203 = math.exp %202 : vector<8x128xf32>
    %cst_50 = arith.constant 1.000000e+00 : f32
    %204 = vector.broadcast %cst_50 : f32 to vector<8x128xf32>
    %205 = arith.addf %204, %203 : vector<8x128xf32>
    %206 = arith.divf %204, %205 : vector<8x128xf32>
    %207 = vector.extract_strided_slice %196 {offsets = [0, 128], sizes = [8, 128], strides = [1, 1]} : vector<8x384xf32> to vector<8x128xf32>
    %208 = vector.extract_strided_slice %198 {offsets = [0, 128], sizes = [8, 128], strides = [1, 1]} : vector<8x384xf32> to vector<8x128xf32>
    %209 = arith.addf %207, %208 : vector<8x128xf32>
    %210 = arith.negf %209 : vector<8x128xf32>
    %211 = math.exp %210 : vector<8x128xf32>
    %cst_51 = arith.constant 1.000000e+00 : f32
    %212 = vector.broadcast %cst_51 : f32 to vector<8x128xf32>
    %213 = arith.addf %212, %211 : vector<8x128xf32>
    %214 = arith.divf %212, %213 : vector<8x128xf32>
    %215 = vector.extract_strided_slice %196 {offsets = [0, 256], sizes = [8, 128], strides = [1, 1]} : vector<8x384xf32> to vector<8x128xf32>
    %216 = vector.extract_strided_slice %198 {offsets = [0, 256], sizes = [8, 128], strides = [1, 1]} : vector<8x384xf32> to vector<8x128xf32>
    %217 = arith.addf %216, %11 : vector<8x128xf32>
    %218 = arith.mulf %206, %217 : vector<8x128xf32>
    %219 = arith.addf %215, %218 : vector<8x128xf32>
    %220 = math.tanh %219 : vector<8x128xf32>
    %cst_52 = arith.constant 1.000000e+00 : f32
    %221 = vector.broadcast %cst_52 : f32 to vector<8x128xf32>
    %222 = arith.subf %221, %214 : vector<8x128xf32>
    %223 = arith.mulf %222, %220 : vector<8x128xf32>
    %224 = arith.mulf %214, %189 : vector<8x128xf32>
    %225 = arith.addf %223, %224 : vector<8x128xf32>
    %226 = arith.truncf %225 : vector<8x128xf32> to vector<8x128xbf16>
    %227 = arith.index_cast %194 : i32 to index
    %c0_53 = arith.constant 0 : index
    %228 = vector.load %arg11[%227, %c0_53] : memref<64x128xbf16, #tpu.memory_space<vmem>>, vector<8x128xbf16>
    tpu.vector_store %arg11[%227, %c0_53], %226 {strides = array<i32>} : memref<64x128xbf16, #tpu.memory_space<vmem>>, vector<8x128xbf16>,
    %c6_i32 = arith.constant 6 : i32
    %c8_i32_54 = arith.constant 8 : i32
    %229 = arith.muli %c6_i32, %c8_i32_54 : i32
    %230 = tpu.assume_multiple %229, 8 : i32
    %231 = arith.index_cast %230 : i32 to index
    %c0_55 = arith.constant 0 : index
    %232 = vector.load %arg10[%231, %c0_55] : memref<64x384xf32, #tpu.memory_space<vmem>>, vector<8x384xf32>
    %233 = arith.truncf %225 : vector<8x128xf32> to vector<8x128xbf16>
    %cst_56 = arith.constant dense<0.000000e+00> : vector<8x384xf32>
    %234 = tpu.matmul %233, %8, %cst_56 {dimension_numbers = #tpu.dot_dimension_numbers<[1], [0], [0], [1], [0, 0, 1, 1], [], []>} : vector<8x128xbf16>, vector<128x384xbf16>, vector<8x384xf32> -> vector<8x384xf32>
    %235 = vector.extract_strided_slice %232 {offsets = [0, 0], sizes = [8, 128], strides = [1, 1]} : vector<8x384xf32> to vector<8x128xf32>
    %236 = vector.extract_strided_slice %234 {offsets = [0, 0], sizes = [8, 128], strides = [1, 1]} : vector<8x384xf32> to vector<8x128xf32>
    %237 = arith.addf %235, %236 : vector<8x128xf32>
    %238 = arith.negf %237 : vector<8x128xf32>
    %239 = math.exp %238 : vector<8x128xf32>
    %cst_57 = arith.constant 1.000000e+00 : f32
    %240 = vector.broadcast %cst_57 : f32 to vector<8x128xf32>
    %241 = arith.addf %240, %239 : vector<8x128xf32>
    %242 = arith.divf %240, %241 : vector<8x128xf32>
    %243 = vector.extract_strided_slice %232 {offsets = [0, 128], sizes = [8, 128], strides = [1, 1]} : vector<8x384xf32> to vector<8x128xf32>
    %244 = vector.extract_strided_slice %234 {offsets = [0, 128], sizes = [8, 128], strides = [1, 1]} : vector<8x384xf32> to vector<8x128xf32>
    %245 = arith.addf %243, %244 : vector<8x128xf32>
    %246 = arith.negf %245 : vector<8x128xf32>
    %247 = math.exp %246 : vector<8x128xf32>
    %cst_58 = arith.constant 1.000000e+00 : f32
    %248 = vector.broadcast %cst_58 : f32 to vector<8x128xf32>
    %249 = arith.addf %248, %247 : vector<8x128xf32>
    %250 = arith.divf %248, %249 : vector<8x128xf32>
    %251 = vector.extract_strided_slice %232 {offsets = [0, 256], sizes = [8, 128], strides = [1, 1]} : vector<8x384xf32> to vector<8x128xf32>
    %252 = vector.extract_strided_slice %234 {offsets = [0, 256], sizes = [8, 128], strides = [1, 1]} : vector<8x384xf32> to vector<8x128xf32>
    %253 = arith.addf %252, %11 : vector<8x128xf32>
    %254 = arith.mulf %242, %253 : vector<8x128xf32>
    %255 = arith.addf %251, %254 : vector<8x128xf32>
    %256 = math.tanh %255 : vector<8x128xf32>
    %cst_59 = arith.constant 1.000000e+00 : f32
    %257 = vector.broadcast %cst_59 : f32 to vector<8x128xf32>
    %258 = arith.subf %257, %250 : vector<8x128xf32>
    %259 = arith.mulf %258, %256 : vector<8x128xf32>
    %260 = arith.mulf %250, %225 : vector<8x128xf32>
    %261 = arith.addf %259, %260 : vector<8x128xf32>
    %262 = arith.truncf %261 : vector<8x128xf32> to vector<8x128xbf16>
    %263 = arith.index_cast %230 : i32 to index
    %c0_60 = arith.constant 0 : index
    %264 = vector.load %arg11[%263, %c0_60] : memref<64x128xbf16, #tpu.memory_space<vmem>>, vector<8x128xbf16>
    tpu.vector_store %arg11[%263, %c0_60], %262 {strides = array<i32>} : memref<64x128xbf16, #tpu.memory_space<vmem>>, vector<8x128xbf16>,
    %c7_i32 = arith.constant 7 : i32
    %c8_i32_61 = arith.constant 8 : i32
    %265 = arith.muli %c7_i32, %c8_i32_61 : i32
    %266 = tpu.assume_multiple %265, 8 : i32
    %267 = arith.index_cast %266 : i32 to index
    %c0_62 = arith.constant 0 : index
    %268 = vector.load %arg10[%267, %c0_62] : memref<64x384xf32, #tpu.memory_space<vmem>>, vector<8x384xf32>
    %269 = arith.truncf %261 : vector<8x128xf32> to vector<8x128xbf16>
    %cst_63 = arith.constant dense<0.000000e+00> : vector<8x384xf32>
    %270 = tpu.matmul %269, %8, %cst_63 {dimension_numbers = #tpu.dot_dimension_numbers<[1], [0], [0], [1], [0, 0, 1, 1], [], []>} : vector<8x128xbf16>, vector<128x384xbf16>, vector<8x384xf32> -> vector<8x384xf32>
    %271 = vector.extract_strided_slice %268 {offsets = [0, 0], sizes = [8, 128], strides = [1, 1]} : vector<8x384xf32> to vector<8x128xf32>
    %272 = vector.extract_strided_slice %270 {offsets = [0, 0], sizes = [8, 128], strides = [1, 1]} : vector<8x384xf32> to vector<8x128xf32>
    %273 = arith.addf %271, %272 : vector<8x128xf32>
    %274 = arith.negf %273 : vector<8x128xf32>
    %275 = math.exp %274 : vector<8x128xf32>
    %cst_64 = arith.constant 1.000000e+00 : f32
    %276 = vector.broadcast %cst_64 : f32 to vector<8x128xf32>
    %277 = arith.addf %276, %275 : vector<8x128xf32>
    %278 = arith.divf %276, %277 : vector<8x128xf32>
    %279 = vector.extract_strided_slice %268 {offsets = [0, 128], sizes = [8, 128], strides = [1, 1]} : vector<8x384xf32> to vector<8x128xf32>
    %280 = vector.extract_strided_slice %270 {offsets = [0, 128], sizes = [8, 128], strides = [1, 1]} : vector<8x384xf32> to vector<8x128xf32>
    %281 = arith.addf %279, %280 : vector<8x128xf32>
    %282 = arith.negf %281 : vector<8x128xf32>
    %283 = math.exp %282 : vector<8x128xf32>
    %cst_65 = arith.constant 1.000000e+00 : f32
    %284 = vector.broadcast %cst_65 : f32 to vector<8x128xf32>
    %285 = arith.addf %284, %283 : vector<8x128xf32>
    %286 = arith.divf %284, %285 : vector<8x128xf32>
    %287 = vector.extract_strided_slice %268 {offsets = [0, 256], sizes = [8, 128], strides = [1, 1]} : vector<8x384xf32> to vector<8x128xf32>
    %288 = vector.extract_strided_slice %270 {offsets = [0, 256], sizes = [8, 128], strides = [1, 1]} : vector<8x384xf32> to vector<8x128xf32>
    %289 = arith.addf %288, %11 : vector<8x128xf32>
    %290 = arith.mulf %278, %289 : vector<8x128xf32>
    %291 = arith.addf %287, %290 : vector<8x128xf32>
    %292 = math.tanh %291 : vector<8x128xf32>
    %cst_66 = arith.constant 1.000000e+00 : f32
    %293 = vector.broadcast %cst_66 : f32 to vector<8x128xf32>
    %294 = arith.subf %293, %286 : vector<8x128xf32>
    %295 = arith.mulf %294, %292 : vector<8x128xf32>
    %296 = arith.mulf %286, %261 : vector<8x128xf32>
    %297 = arith.addf %295, %296 : vector<8x128xf32>
    %298 = arith.truncf %297 : vector<8x128xf32> to vector<8x128xbf16>
    %299 = arith.index_cast %266 : i32 to index
    %c0_67 = arith.constant 0 : index
    %300 = vector.load %arg11[%299, %c0_67] : memref<64x128xbf16, #tpu.memory_space<vmem>>, vector<8x128xbf16>
    tpu.vector_store %arg11[%299, %c0_67], %298 {strides = array<i32>} : memref<64x128xbf16, #tpu.memory_space<vmem>>, vector<8x128xbf16>,
    %c8_i32_68 = arith.constant 8 : i32
    %c0_69 = arith.constant 0 : index
    %c0_70 = arith.constant 0 : index
    %301 = vector.load %arg11[%c0_69, %c0_70] : memref<64x128xbf16, #tpu.memory_space<vmem>>, vector<64x128xbf16>
    %302 = vector.shape_cast %301 : vector<64x128xbf16> to vector<8x8x128xbf16>
    %303 = tpu.transpose %302, [1, 0, 2] : vector<8x8x128xbf16> -> vector<8x8x128xbf16>
    %304 = vector.shape_cast %303 : vector<8x8x128xbf16> to vector<64x128xbf16>
    %c0_71 = arith.constant 0 : index
    %c0_72 = arith.constant 0 : index
    %305 = vector.load %arg7[%c0_71, %c0_72] : memref<128x128xbf16, #tpu.memory_space<vmem>>, vector<128x128xbf16>
    %cst_73 = arith.constant dense<0.000000e+00> : vector<64x128xf32>
    %306 = tpu.matmul %304, %305, %cst_73 {dimension_numbers = #tpu.dot_dimension_numbers<[1], [0], [0], [1], [0, 0, 1, 1], [], []>} : vector<64x128xbf16>, vector<128x128xbf16>, vector<64x128xf32> -> vector<64x128xf32>
    %c0_74 = arith.constant 0 : index
    %c0_75 = arith.constant 0 : index
    %307 = vector.load %arg8[%c0_74, %c0_75] : memref<1x128xf32, #tpu.memory_space<vmem>>, vector<1x128xf32>
    %308 = vector.broadcast %307 : vector<1x128xf32> to vector<64x128xf32>
    %309 = arith.addf %306, %308 : vector<64x128xf32>
    %310 = vector.shape_cast %309 : vector<64x128xf32> to vector<8x8x128xf32>
    %c0_76 = arith.constant 0 : index
    %c0_77 = arith.constant 0 : index
    %c0_78 = arith.constant 0 : index
    %311 = vector.load %arg2[%c0_76, %c0_77, %c0_78] : memref<8x8x128xbf16, #tpu.memory_space<vmem>>, vector<8x8x128xbf16>
    %312 = arith.truncf %310 : vector<8x8x128xf32> to vector<8x8x128xbf16>
    "tpu.trace_start"() <{level = 10 : i32, message = "bqd,bkd->bqk"}> : () -> ()
    %cst_79 = arith.constant dense<0.000000e+00> : vector<8x8x8xf32>
    %313 = tpu.matmul %312, %311, %cst_79 {dimension_numbers = #tpu.dot_dimension_numbers<[2], [2], [1], [1], [0, 0, 0, 1, 1, 1], [0], [0]>} : vector<8x8x128xbf16>, vector<8x8x128xbf16>, vector<8x8x8xf32> -> vector<8x8x8xf32>
    "tpu.trace_stop"() : () -> ()
    %cst_80 = arith.constant dense<0xFF800000> : vector<8x8xf32>
    %314 = vector.multi_reduction <maximumf>, %313, %cst_80 [2] : vector<8x8x8xf32> to vector<8x8xf32>
    %315 = vector.shape_cast %314 : vector<8x8xf32> to vector<8x8x1xf32>
    %316 = vector.broadcast %315 : vector<8x8x1xf32> to vector<8x8x8xf32>
    %317 = arith.subf %313, %316 : vector<8x8x8xf32>
    %318 = math.exp %317 : vector<8x8x8xf32>
    %cst_81 = arith.constant dense<0.000000e+00> : vector<8x8xf32>
    %319 = vector.multi_reduction <add>, %318, %cst_81 [2] : vector<8x8x8xf32> to vector<8x8xf32>
    %320 = vector.shape_cast %319 : vector<8x8xf32> to vector<8x8x1xf32>
    %321 = math.log %320 : vector<8x8x1xf32>
    %322 = arith.addf %315, %321 : vector<8x8x1xf32>
    %323 = arith.extf %311 : vector<8x8x128xbf16> to vector<8x8x128xf32>
    %324 = arith.mulf %310, %323 : vector<8x8x128xf32>
    %cst_82 = arith.constant dense<0.000000e+00> : vector<8x8xf32>
    %325 = vector.multi_reduction <add>, %324, %cst_82 [2] : vector<8x8x128xf32> to vector<8x8xf32>
    %326 = vector.shape_cast %325 : vector<8x8xf32> to vector<8x8x1xf32>
    %327 = arith.subf %322, %326 : vector<8x8x1xf32>
    %cst_83 = arith.constant dense<0.000000e+00> : vector<8x1xf32>
    %328 = vector.multi_reduction <add>, %327, %cst_83 [1] : vector<8x8x1xf32> to vector<8x1xf32>
    %cst_84 = arith.constant 8.000000e+00 : f32
    %329 = vector.broadcast %cst_84 : f32 to vector<8x1xf32>
    %330 = arith.divf %328, %329 : vector<8x1xf32>
    %c0_85 = arith.constant 0 : index
    %c0_86 = arith.constant 0 : index
    %331 = vector.load %arg9[%c0_85, %c0_86] : memref<8x1xf32, #tpu.memory_space<vmem>>, vector<8x1xf32>
    tpu.vector_store %arg9[%c0_85, %c0_86], %330 {strides = array<i32>} : memref<8x1xf32, #tpu.memory_space<vmem>>, vector<8x1xf32>,
    return
  }
  func.func @transform_0(%arg0: i32) -> (i32, i32, i32) {
    %c0_i32 = arith.constant 0 : i32
    %c0_i32_0 = arith.constant 0 : i32
    %c0_i32_1 = arith.constant 0 : i32
    return %c0_i32, %arg0, %c0_i32_0 : i32, i32, i32
  }
  func.func @transform_1(%arg0: i32) -> (i32, i32, i32) {
    %c0_i32 = arith.constant 0 : i32
    %c0_i32_0 = arith.constant 0 : i32
    %c0_i32_1 = arith.constant 0 : i32
    return %arg0, %c0_i32, %c0_i32_0 : i32, i32, i32
  }
  func.func @transform_2(%arg0: i32) -> (i32, i32) {
    %c0_i32 = arith.constant 0 : i32
    %c0_i32_0 = arith.constant 0 : i32
    %c0_i32_1 = arith.constant 0 : i32
    return %c0_i32, %c0_i32_0 : i32, i32
  }
  func.func @transform_3(%arg0: i32) -> (i32, i32) {
    %c0_i32 = arith.constant 0 : i32
    %c0_i32_0 = arith.constant 0 : i32
    %c0_i32_1 = arith.constant 0 : i32
    return %c0_i32, %c0_i32_0 : i32, i32
  }
  func.func @transform_4(%arg0: i32) -> (i32, i32) {
    %c0_i32 = arith.constant 0 : i32
    %c0_i32_0 = arith.constant 0 : i32
    %c0_i32_1 = arith.constant 0 : i32
    return %c0_i32, %c0_i32_0 : i32, i32
  }
  func.func @transform_5(%arg0: i32) -> (i32, i32) {
    %c0_i32 = arith.constant 0 : i32
    %c0_i32_0 = arith.constant 0 : i32
    %c0_i32_1 = arith.constant 0 : i32
    return %c0_i32, %c0_i32_0 : i32, i32
  }
  func.func @transform_6(%arg0: i32) -> (i32, i32) {
    %c0_i32 = arith.constant 0 : i32
    %c0_i32_0 = arith.constant 0 : i32
    %c0_i32_1 = arith.constant 0 : i32
    return %c0_i32, %c0_i32_0 : i32, i32
  }
  func.func @transform_7(%arg0: i32) -> (i32, i32) {
    %c0_i32 = arith.constant 0 : i32
    %c0_i32_0 = arith.constant 0 : i32
    %c0_i32_1 = arith.constant 0 : i32
    return %c0_i32, %c0_i32_0 : i32, i32
  }
  func.func @transform_8(%arg0: i32) -> (i32, i32) {
    %c0_i32 = arith.constant 0 : i32
    %c0_i32_0 = arith.constant 0 : i32
    return %arg0, %c0_i32 : i32, i32
  }
}

</mosaic_0001>

<bundles_post_ra>
// kernel: tpu_custom_call.1
= control target key start
LH: loop header
LB: loop body
LE: loop exit
PB: predicated region body
PF: predicated region fallthrough
CT: control target
= control target key end

     0   :  { %s3767_s0 = inlined_call_operand.hbm [shape: bf16[8,16,128], index: 0, kind: input, shape index: {}]   ;;  %s3768_s1 = inlined_call_operand.hbm [shape: bf16[16,8,128], index: 1, kind: input, shape index: {}]   ;;  %s3769_s2 = inlined_call_operand.hbm [shape: bf16[128,384], index: 2, kind: input, shape index: {}]   ;;  %s3770_s3 = inlined_call_operand.hbm [shape: bf16[128,384], index: 3, kind: input, shape index: {}]   ;;  %s3771_s4 = inlined_call_operand.vmem [shape: f32[1,384], index: 4, kind: input, shape index: {}]   ;;  %s3772_s5 = inlined_call_operand.vmem [shape: f32[1,128], index: 5, kind: input, shape index: {}]   ;;  %s3773_s6 = inlined_call_operand.hbm [shape: bf16[128,128], index: 6, kind: input, shape index: {}]   ;;  %s3774_s7 = inlined_call_operand.vmem [shape: f32[1,128], index: 7, kind: input, shape index: {}]   ;;  %s3775_s8 = inlined_call_operand.vmem [shape: f32[16,1], index: 8, kind: output, shape index: {}]  }
   0x1   :  { %3780 = sst [smem:[#allocation21_spill]] %s3767_s0 }
   0x2   :  { %3781 = sst [smem:[#allocation22_spill]] %s3769_s2 }
   0x3   :  { %3782 = sst [smem:[#allocation23_spill]] %s3770_s3 }
   0x4   :  { %3783 = sst [smem:[#allocation24_spill]] %s3773_s6 }
   0x5   :  { %13 = vsyncpa [#allocation5], 0 }
   0x6   :  { %15 = vsyncpa [#allocation5 + $0x1], 0 }
   0x7   :  { %16 = vsyncpa [#allocation7], 0 }
   0x8   :  { %18 = vsyncpa [#allocation7 + $0x1], 0 }
   0x9   :  { %19 = vsyncpa [#allocation10], 0  ;;  %s3123_s27 = smov 0   ;;  %s3125_s28 = smov 0  }
   0xa   :  { %s3127_s29 = smov 0   ;;  %s3129_s30 = smov 0  }
   0xb LB: > { %s3142_s9 = sadd.s32 4294967295, %s3064_s30   ;;  %p45_p0 = scmp.ne.s32.totalorder %s3056_s28, %s3052_s27  ;;  %s3064_s30 = sphi %s3129_s30, %s3807_s30   ;;  %s3060_s29 = sphi %s3127_s29, %s3806_s29   ;;  %s3056_s28 = sphi %s3125_s28, %s3805_s28   ;;  %s3052_s27 = sphi %s3123_s27, %s3804_s27  }
   0xc   : > { %p46_p1 = scmp.eq.s32.totalorder %s3142_s9, 0  ;;  %p2331_p2 = scmp.ge.s32.totalorder %s3064_s30, 1 }
   0xd   : > { %p234_p3 = scmp.lt.s32.totalorder %s3064_s30, 3  ;;  %s3785_s2 = sld [smem:[#allocation22_spill]] }
   0xe   : > { %p3150_p4 = por %p46_p1, %p45_p0  ;;  %s3066_s15 = smov [#allocation8]  }
   0xf   : > { %p3157_p5 = pnand %p2331_p2, %p234_p3  ;;  %s247_s16 = sshll.u32 %s3066_s15, 4  ;;  %s248_s16 = int_to_ptr.vmem [resolvable:$true] %s247_s16 }
  0x10   : > { %s3788_s3 = sld [smem:[#allocation23_spill]]  ;;  %s3067_s21 = smov 192  }
  0x11   : > { %p2683_p6 = pneg %p3157_p5  ;;  %s3068_s22 = smov 12  }
  0x12   : > { %s3069_s23 = smov [#allocation9]   ;;  %s3789_s6 = sld [smem:[#allocation24_spill]] }
  0x13   : > { %s245_s13 = sshll.u32 %s3785_s2, 4  ;;  %p3165_p7 = pnand %p2683_p6, %p46_p1  ;;  %s246_s13 = int_to_ptr.hbm [resolvable:$true] %s245_s13 }
  0x14   : > { %s261_s24 = sshll.u32 %s3069_s23, 4  ;;  %s3070_s11 = smov [#allocation11]   ;;  %s262_s24 = int_to_ptr.vmem [resolvable:$true] %s261_s24 }
  0x15   : > { %2686 = dma.hbm_to_vmem [thread:$0]  (!%p3165_p7), %s246_s13, 3072, %s248_s16, [#allocation7], %s3067_s21, %s3067_s21, %s3068_s22  }
  0x16   : > { %s259_s20 = sshll.u32 %s3788_s3, 4  ;;  %s281_s12 = sshll.u32 %s3070_s11, 4  ;;  %s260_s20 = int_to_ptr.hbm [resolvable:$true] %s259_s20  ;;  %s282_s12 = int_to_ptr.vmem [resolvable:$true] %s281_s12 }
  0x17   : > { %2689 = dma.hbm_to_vmem [thread:$0]  (!%p3165_p7), %s260_s20, 3072, %s262_s24, [#allocation10], %s3067_s21, %s3067_s21, %s3068_s22  }
  0x18   : > { %s279_s27 = sshll.u32 %s3789_s6, 4  ;;  %s3776_s13 = smov 64   ;;  %s280_s27 = int_to_ptr.hbm [resolvable:$true] %s279_s27 }
  0x19   : > { %s3778_s15 = smov 4   ;;  %s3185_s16 = sadd.s32 1, %s3064_s30  }
  0x1a   : > { %2692 = dma.hbm_to_vmem [thread:$0]  (!%p3165_p7), %s280_s27, 1024, %s282_s12, [#allocation10], %s3776_s13, %s3776_s13, %s3778_s15  }
  0x1b   : > { %s29_s18 = ssub.s32 %s3064_s30, %s3185_s16  ;;  %s32_s19 = sadd.s32 1, %s3060_s29 }
  0x1c   : > { %p30_p8 = scmp.eq.s32.totalorder %s29_s18, 0  ;;  %p39_p9 = scmp.ne.s32.totalorder %s3060_s29, %s3056_s28 }
  0x1d   : > { %p40_p10 = scmp.eq.s32.totalorder %s3064_s30, 0  ;;  %p2703_p11 = scmp.lt.s32.totalorder %s3064_s30, 2 }
  0x1e   : > { %s3195_s20 = scalar_select %p30_p8, %s3060_s29, %s32_s19  }
  0x1f   : > { %p41_p12 = por %p40_p10, %p39_p9  ;;  %s298_s21 = sand.u32 1, %s3060_s29  }
  0x20   : > { %3790 = sst [smem:[#allocation16_spill]] %s3195_s20  ;;  %s3198_s22 = sshll.u32 %s298_s21, 5 }
  0x21   : > { %s2337_s17 = sshll.u32 %s3064_s30, 2  ;;  %s3791_s0 = sld [smem:[#allocation21_spill]] }
  0x22   : > { %s302_s26 = scalar_lea.vmem [#allocation4], %s3198_s22  ;;  %p3205_p13 = pnand %p2703_p11, %p41_p12 }
  0x23   : > { %s309_s27 = sshll.u32 %s302_s26, 4  ;;  %s319_s18 = sand.u32 1, %s3064_s30   ;;  %s310_s27 = int_to_ptr.vmem [resolvable:$true] %s309_s27 }
  0x24   : > { %s299_s19 = scalar_lea.sflag [#allocation5], %s298_s21  ;;  %p2962_p2 = pneg %p3205_p13 }
  0x27   : > { %s306_s25 = scalar_lea.hbm %s3791_s0, %s2337_s17  ;;  %s2965_s24 = scalar_lea.hbm %s3791_s0, 64 }
  0x28   : > { %s307_s11 = sshll.u32 %s306_s25, 4  ;;  %s308_s11 = int_to_ptr.hbm [resolvable:$true] %s307_s11 }
  0x29   : > { %s2958_s13 = sshra.s32 %s308_s11, 4  ;;  %s2959_s13 = int_to_ptr.hbm [resolvable:$true] %s2958_s13 }
  0x2a   : > { %s2960_s15 = scalar_lea.hbm %s2959_s13, 32  ;;  %p2966_p7 = scmp.lt.s32.totalorder %s2959_s13, %s3791_s0 }
  0x2b   : > { %p2961_p0 = scmp.ne.s32.totalorder %s2959_s13, %s2960_s15  ;;  %p2967_p8 = scmp.lt.s32.totalorder %s2965_s24, %s2960_s15 }
  0x2d   : > { %p2963_p3 = pnand %p2962_p2, %p2961_p0  ;;  %p2968_p9 = por %p2967_p8, %p2966_p7 }
  0x2f   : > { %p2964_p6 = pneg %p2963_p3 }
  0x31   : > { %p2969_p10 = pnand %p2968_p9, %p2964_p6 }
  0x33   : > { %2972 = shalt.err (!%p2969_p10)
}
  0x34   : > { %s3073_s21 = smov 128   ;;  %s3793_s2 = smov 4  }
  0x35   : > { %s3794_s3 = smov 64   ;;  %s2606_s6 = sshll.u32 %s3064_s30, 5 }
  0x36   : > { %2696 = dma.hbm_to_vmem [thread:$0]  (!%p3205_p13), %s308_s11, 512, %s310_s27, %s299_s19, %s3073_s21, %s3794_s3, %s3793_s2  }
  0x37   : > { %s328_s20 = scalar_lea.hbm %s3768_s1, %s2606_s6  ;;  %s323_s25 = scalar_lea.vmem [#allocation6], %s3198_s22 }
  0x38   : > { %s331_s13 = sshll.u32 %s323_s25, 4  ;;  %s329_s15 = sshll.u32 %s328_s20, 4  ;;  %s332_s13 = int_to_ptr.vmem [resolvable:$true] %s331_s13  ;;  %s330_s15 = int_to_ptr.hbm [resolvable:$true] %s329_s15 }
  0x39   : > { %s320_s24 = scalar_lea.sflag [#allocation7], %s319_s18  ;;  %s2988_s26 = sshra.s32 %s330_s15, 4  ;;  %s2989_s26 = int_to_ptr.hbm [resolvable:$true] %s2988_s26 }
  0x3a   : > { %s2990_s0 = scalar_lea.hbm %s2989_s26, 32  ;;  %s2995_s11 = scalar_lea.hbm %s3768_s1, 64 }
  0x3b   : > { %p2991_p11 = scmp.ne.s32.totalorder %s2989_s26, %s2990_s0  ;;  %p2996_p3 = scmp.lt.s32.totalorder %s2989_s26, %s3768_s1 }
  0x3c   : > { %p2997_p6 = scmp.lt.s32.totalorder %s2995_s11, %s2990_s0 }
  0x3d   : > { %p2993_p12 = pnand %p2991_p11, %p2962_p2 }
  0x3e   : > { %p2998_p7 = por %p2997_p6, %p2996_p3 }
  0x3f   : > { %p2994_p0 = pneg %p2993_p12 }
  0x41   : > { %p2999_p8 = pnand %p2998_p7, %p2994_p0 }
  0x43   : > { %3002 = shalt.err (!%p2999_p8)
}
  0x44   : > { %2699 = dma.hbm_to_vmem [thread:$0]  (!%p3205_p13), %s330_s15, 512, %s332_s13, %s320_s24, %s3794_s3, %s3794_s3, %s3793_s2  }
  0x45   : > { %343 = sbr.rel (%p3157_p5) target bundleno = 2188 (0x88c), region = 52 }
  0x4a   : > { %s345_s20 = sand.u32 1, %s3056_s28  }
  0x4b   : > { %s2342_s22 = sshll.u32 %s345_s20, 5  ;;  %s346_s18 = scalar_lea.sflag [#allocation5], %s345_s20 }
  0x4c   : > { %s3247_s21 = scalar_lea.vmem [#allocation4], %s2342_s22 }
  0x4d   : > { %3035 = dma.done.wait (%p3150_p4), %s346_s18, 512  }
  0x4e   : > { %3037 = vsyncadd (%p3150_p4), %s346_s18, 4294966784  ;;  %s355_s0 = sand.u32 1, %s3142_s9   ;;  %s3254_s2 = scalar_lea.vmem [#allocation6], %s2342_s22 }
  0x4f   : > { %s356_s12 = scalar_lea.sflag [#allocation7], %s355_s0 }
  0x50   : > { %3039 = dma.done.wait (%p3150_p4), %s356_s12, 512  }
  0x51   : > { %3041 = vsyncadd (%p3150_p4), %s356_s12, 4294966784 }
  0x52   : > { %3043 = dma.done.wait (%p46_p1), [#allocation7], 3072  }
  0x53   : > { %3045 = vsyncadd (%p46_p1), [#allocation7], 4294964224 }
  0x54   : > { %3047 = dma.done.wait (%p46_p1), [#allocation10], 4096  }
  0x55   : > { %3049 = vsyncadd (%p46_p1), [#allocation10], 4294963200  ;;  %v2450_v0 = vld [vmem:[#allocation8 + $0xa8] sm:$0xf]  ;;  %v2633_v1 = vld [vmem:[#allocation8 + $0xb0] sm:$0xf0] }
  0x56   : > { %v2546_v2 = vld [vmem:[#allocation9 + $0xa8] sm:$0xf]  ;;  %v2451_v3 = vor.u32 %v2633_v1, %v2450_v0  ;;  %v2657_v4 = vld [vmem:[#allocation9 + $0xb0] sm:$0xf0]  ;;  %v2438_v5 = vld [vmem:[#allocation8 + $0x90] sm:$0xf] }
  0x57   : > { %v2630_v6 = vld [vmem:[#allocation8 + $0x98] sm:$0xf0]  ;;  %v3268_v7 = vor.u32 %v2657_v4, %v2546_v2  ;;  %v2534_v8 = vld [vmem:[#allocation9 + $0x90] sm:$0xf]  ;;  %v2426_v12 = vld [vmem:[#allocation8 + $0x78] sm:$0xf] }
  0x58   : > { %v2654_v9 = vld [vmem:[#allocation9 + $0x98] sm:$0xf0]  ;;  %618 = vmatpush.bf16.msra.mxu0 %v2451_v3  ;;  %v2439_v10 = vor.u32 %v2630_v6, %v2438_v5  ;;  %v2627_v13 = vld [vmem:[#allocation8 + $0x80] sm:$0xf0]  ;;  %v2522_v14 = vld [vmem:[#allocation9 + $0x78] sm:$0xf] }
  0x59   : > { %899 = vmatpush.bf16.msra.mxu3 %v3268_v7  ;;  %v3271_v11 = vor.u32 %v2654_v9, %v2534_v8  ;;  %v2651_v15 = vld [vmem:[#allocation9 + $0x80] sm:$0xf0]  ;;  %v2427_v16 = vor.u32 %v2627_v13, %v2426_v12  ;;  %v2414_v18 = vld [vmem:[#allocation8 + $0x60] sm:$0xf]  ;;  %v2624_v19 = vld [vmem:[#allocation8 + $0x68] sm:$0xf0] }
  0x5a   : > { %v3274_v17 = vor.u32 %v2651_v15, %v2522_v14  ;;  %v2510_v20 = vld [vmem:[#allocation9 + $0x60] sm:$0xf]  ;;  %v2648_v21 = vld [vmem:[#allocation9 + $0x68] sm:$0xf0]  ;;  %v2415_v22 = vor.u32 %v2624_v19, %v2414_v18  ;;  %v2402_v23 = vld [vmem:[#allocation8 + $0x48] sm:$0xf] }
  0x5b   : > { %v3277_v24 = vor.u32 %v2648_v21, %v2510_v20  ;;  %v2621_v25 = vld [vmem:[#allocation8 + $0x50] sm:$0xf0]  ;;  %v2632_v26 = vld [vmem:[#allocation8 + $0xac] sm:$0xf]  ;;  %v2452_v27 = vld [vmem:[#allocation8 + $0xb4] sm:$0xf0] }
  0x5c   : > { %619 = vmatpush.bf16.msra.mxu0 %v2439_v10  ;;  %v2498_v28 = vld [vmem:[#allocation9 + $0x48] sm:$0xf]  ;;  %v2645_v29 = vld [vmem:[#allocation9 + $0x50] sm:$0xf0]  ;;  %v2455_v30 = vor.u32 %v2632_v26, %v2452_v27  ;;  %v2440_v32 = vld [vmem:[#allocation8 + $0x9c] sm:$0xf0]  ;;  %v2403_v33 = vor.u32 %v2621_v25, %v2402_v23 }
  0x5d   : > { %900 = vmatpush.bf16.msra.mxu3 %v3271_v11  ;;  %v2629_v31 = vld [vmem:[#allocation8 + $0x94] sm:$0xf]  ;;  %v2390_v34 = vld [vmem:[#allocation8 + $0x30] sm:$0xf]  ;;  %v3280_v36 = vor.u32 %v2645_v29, %v2498_v28  ;;  %v2618_v37 = vld [vmem:[#allocation8 + $0x38] sm:$0xf0] }
  0x5e   : > { %647 = vmatpush.bf16.msra.mxu1 %v2455_v30  ;;  %v2443_v35 = vor.u32 %v2629_v31, %v2440_v32  ;;  %v2626_v38 = vld [vmem:[#allocation8 + $0x7c] sm:$0xf]  ;;  %v2428_v39 = vld [vmem:[#allocation8 + $0x84] sm:$0xf0]  ;;  %v2486_v40 = vld [vmem:[#allocation9 + $0x30] sm:$0xf]  ;;  %v2391_v42 = vor.u32 %v2618_v37, %v2390_v34 }
  0x5f   : > { %v2642_v41 = vld [vmem:[#allocation9 + $0x38] sm:$0xf0]  ;;  %v2378_v43 = vld [vmem:[#allocation8 + $0x18] sm:$0xf]  ;;  %v2615_v44 = vld [vmem:[#allocation8 + $0x20] sm:$0xf0]  ;;  %v2431_v46 = vor.u32 %v2626_v38, %v2428_v39 }
  0x60   : > { %620 = vmatpush.bf16.msra.mxu0 %v2427_v16  ;;  %v2474_v45 = vld [vmem:[#allocation9 + $0x18] sm:$0xf]  ;;  %v3283_v47 = vor.u32 %v2642_v41, %v2486_v40  ;;  %v2623_v48 = vld [vmem:[#allocation8 + $0x64] sm:$0xf]  ;;  %v2416_v49 = vld [vmem:[#allocation8 + $0x6c] sm:$0xf0]  ;;  %v2379_v55 = vor.u32 %v2615_v44, %v2378_v43 }
  0x61   : > { %901 = vmatpush.bf16.msra.mxu3 %v3274_v17  ;;  %v2639_v50 = vld [vmem:[#allocation9 + $0x20] sm:$0xf0]  ;;  %v2458_v51 = vld [vmem:[#allocation8 + $0xb0] sm:$0xf]  ;;  %v2634_v52 = vld [vmem:[#allocation8 + $0xb8] sm:$0xf0]  ;;  %v2419_v58 = vor.u32 %v2623_v48, %v2416_v49 }
  0x62   : > { %648 = vmatpush.bf16.msra.mxu1 %v2443_v35  ;;  %v2366_v53 = vld [vmem:[#allocation8] sm:$0xf]  ;;  %v2459_v54 = vor.u32 %v2634_v52, %v2458_v51  ;;  %v2612_v56 = vld [vmem:[#allocation8 + $0x8] sm:$0xf0]  ;;  %v3286_v59 = vor.u32 %v2639_v50, %v2474_v45  ;;  %v2404_v62 = vld [vmem:[#allocation8 + $0x54] sm:$0xf0] }
  0x63   : > { %v2462_v57 = vld [vmem:[#allocation9] sm:$0xf]  ;;  %v2636_v60 = vld [vmem:[#allocation9 + $0x8] sm:$0xf0]  ;;  %v2554_v63 = vld [vmem:[#allocation9 + $0xb0] sm:$0xf]  ;;  %v2367_v5 = vor.u32 %v2612_v56, %v2366_v53 }
  0x64   : > { %621 = vmatpush.bf16.msra.mxu0 %v2415_v22  ;;  %v2620_v61 = vld [vmem:[#allocation8 + $0x4c] sm:$0xf]  ;;  %676 = vmatpush.bf16.msra.mxu2 %v2459_v54  ;;  %v2658_v0 = vld [vmem:[#allocation9 + $0xb8] sm:$0xf0]  ;;  %v2446_v1 = vld [vmem:[#allocation8 + $0x98] sm:$0xf]  ;;  %v3289_v9 = vor.u32 %v2636_v60, %v2462_v57 }
  0x65   : > { %902 = vmatpush.bf16.msra.mxu3 %v3277_v24  ;;  %v2656_v2 = vld [vmem:[#allocation9 + $0xac] sm:$0xf]  ;;  %v2548_v3 = vld [vmem:[#allocation9 + $0xb4] sm:$0xf0]  ;;  %v2631_v4 = vld [vmem:[#allocation8 + $0xa0] sm:$0xf0]  ;;  %v2407_v6 = vor.u32 %v2620_v61, %v2404_v62  ;;  %v3291_v10 = vor.u32 %v2658_v0, %v2554_v63 }
  0x66   : > { %649 = vmatpush.bf16.msra.mxu1 %v2431_v46  ;;  %v2447_v8 = vor.u32 %v2631_v4, %v2446_v1  ;;  %v2542_v12 = vld [vmem:[#allocation9 + $0x98] sm:$0xf]  ;;  %v2617_v13 = vld [vmem:[#allocation8 + $0x34] sm:$0xf]  ;;  %v2392_v14 = vld [vmem:[#allocation8 + $0x3c] sm:$0xf0]  ;;  %v3293_v15 = vor.u32 %v2656_v2, %v2548_v3 }
  0x67   : > { %v2655_v16 = vld [vmem:[#allocation9 + $0xa0] sm:$0xf0]  ;;  %v2434_v18 = vld [vmem:[#allocation8 + $0x80] sm:$0xf]  ;;  %v2628_v19 = vld [vmem:[#allocation8 + $0x88] sm:$0xf0]  ;;  %v2395_v25 = vor.u32 %v2617_v13, %v2392_v14 }
  0x68   : > { %622 = vmatpush.bf16.msra.mxu0 %v2403_v33  ;;  %677 = vmatpush.bf16.msra.mxu2 %v2447_v8  ;;  %v3296_v20 = vld [vmem:[%s3247_s21] sm:$0xff]  ;;  %v2653_v21 = vld [vmem:[#allocation9 + $0x94] sm:$0xf]  ;;  %v2435_v23 = vor.u32 %v2628_v19, %v2434_v18  ;;  %v3300_v26 = vor.u32 %v2655_v16, %v2542_v12  ;;  %v2614_v28 = vld [vmem:[#allocation8 + $0x1c] sm:$0xf]  ;;  %v3074_v39 = vmov 0  }
  0x69   : > { %903 = vmatpush.bf16.msra.mxu3 %v3280_v36  ;;  %v2536_v22 = vld [vmem:[#allocation9 + $0x9c] sm:$0xf0]  ;;  %v2380_v29 = vld [vmem:[#allocation8 + $0x24] sm:$0xf0]  ;;  %v2652_v31 = vld [vmem:[#allocation9 + $0x88] sm:$0xf0] }
  0x6a   : > { %650 = vmatpush.bf16.msra.mxu1 %v2419_v58  ;;  %v2530_v27 = vld [vmem:[#allocation9 + $0x80] sm:$0xf]  ;;  %v3303_v30 = vor.u32 %v2653_v21, %v2536_v22  ;;  %v2422_v32 = vld [vmem:[#allocation8 + $0x68] sm:$0xf]  ;;  %v2625_v33 = vld [vmem:[#allocation8 + $0x70] sm:$0xf0]  ;;  %v2383_v40 = vor.u32 %v2614_v28, %v2380_v29 }
  0x6b   : > { %v2650_v34 = vld [vmem:[#allocation9 + $0x7c] sm:$0xf]  ;;  %v2524_v35 = vld [vmem:[#allocation9 + $0x84] sm:$0xf0]  ;;  %v2423_v37 = vor.u32 %v2625_v33, %v2422_v32  ;;  %v2410_v38 = vld [vmem:[#allocation8 + $0x50] sm:$0xf] }
  0x6c   : > { %623 = vmatpush.bf16.msra.mxu0 %v2391_v42  ;;  %678 = vmatpush.bf16.msra.mxu2 %v2435_v23  ;;  %v2622_v41 = vld [vmem:[#allocation8 + $0x58] sm:$0xf0]  ;;  %v3308_v42 = vor.u32 %v2652_v31, %v2530_v27  ;;  %v2611_v43 = vld [vmem:[#allocation8 + $0x4] sm:$0xf]  ;;  %v2368_v44 = vld [vmem:[#allocation8 + $0xc] sm:$0xf0]  ;;  %v3311_v45 = vor.u32 %v2650_v34, %v2524_v35 }
  0x6d   : > { %904 = vmatpush.bf16.msra.mxu3 %v3283_v47  ;;  %v2647_v46 = vld [vmem:[#allocation9 + $0x64] sm:$0xf]  ;;  %v2518_v48 = vld [vmem:[#allocation9 + $0x68] sm:$0xf]  ;;  %v2649_v49 = vld [vmem:[#allocation9 + $0x70] sm:$0xf0]  ;;  %v2411_v50 = vor.u32 %v2622_v41, %v2410_v38  ;;  %v2371_v54 = vor.u32 %v2611_v43, %v2368_v44 }
  0x6e   : > { %651 = vmatpush.bf16.msra.mxu1 %v2407_v6  ;;  %v2512_v51 = vld [vmem:[#allocation9 + $0x6c] sm:$0xf0]  ;;  %v2398_v52 = vld [vmem:[#allocation8 + $0x38] sm:$0xf]  ;;  %v2619_v53 = vld [vmem:[#allocation8 + $0x40] sm:$0xf0] }
  0x6f   : > { %v3317_v56 = vor.u32 %v2647_v46, %v2512_v51  ;;  %v2644_v57 = vld [vmem:[#allocation9 + $0x4c] sm:$0xf]  ;;  %v2506_v58 = vld [vmem:[#allocation9 + $0x50] sm:$0xf]  ;;  %v2646_v60 = vld [vmem:[#allocation9 + $0x58] sm:$0xf0]  ;;  %v2399_v61 = vor.u32 %v2619_v53, %v2398_v52 }
  0x70   : > { %624 = vmatpush.bf16.msra.mxu0 %v2379_v55  ;;  %679 = vmatpush.bf16.msra.mxu2 %v2423_v37  ;;  %v3314_v55 = vor.u32 %v2649_v49, %v2518_v48  ;;  %v2500_v62 = vld [vmem:[#allocation9 + $0x54] sm:$0xf0]  ;;  %v2386_v63 = vld [vmem:[#allocation8 + $0x20] sm:$0xf]  ;;  %v2616_v0 = vld [vmem:[#allocation8 + $0x28] sm:$0xf0]  ;;  %v3320_v1 = vor.u32 %v2646_v60, %v2506_v58 }
  0x71   : > { %905 = vmatpush.bf16.msra.mxu3 %v3286_v59  ;;  %v3324_v2 = vor.u32 %v2644_v57, %v2500_v62  ;;  %v2494_v3 = vld [vmem:[#allocation9 + $0x38] sm:$0xf]  ;;  %v2643_v4 = vld [vmem:[#allocation9 + $0x40] sm:$0xf0]  ;;  %v2608_v6 = vld [vmem:[%s3247_s21 + $0x8] sm:$0xff]  ;;  %p413_p1 = scmp.lt.s32.totalorder %s3142_s9, 1 }
  0x72   : > { %652 = vmatpush.bf16.msra.mxu1 %v2395_v25  ;;  %v2641_v8 = vld [vmem:[#allocation9 + $0x34] sm:$0xf]  ;;  %v2488_v12 = vld [vmem:[#allocation9 + $0x3c] sm:$0xf0]  ;;  %v3329_v13 = vor.u32 %v2643_v4, %v2494_v3  ;;  %v2638_v16 = vld [vmem:[#allocation9 + $0x1c] sm:$0xf] }
  0x73   : > { %v3333_v14 = vor.u32 %v2641_v8, %v2488_v12  ;;  %v2374_v18 = vld [vmem:[#allocation8 + $0x8] sm:$0xf]  ;;  %v2613_v19 = vld [vmem:[#allocation8 + $0x10] sm:$0xf0]  ;;  %v2482_v22 = vld [vmem:[#allocation9 + $0x20] sm:$0xf] }
  0x74   : > { %625 = vmatpush.bf16.msra.mxu0 %v2367_v5  ;;  %680 = vmatpush.bf16.msra.mxu2 %v2411_v50  ;;  %v2387_v5 = vor.u32 %v2616_v0, %v2386_v63  ;;  %v2476_v21 = vld [vmem:[#allocation9 + $0x24] sm:$0xf0]  ;;  %v2640_v23 = vld [vmem:[#allocation9 + $0x28] sm:$0xf0]  ;;  %v2375_v25 = vor.u32 %v2613_v19, %v2374_v18  ;;  %v2637_v31 = vld [vmem:[#allocation9 + $0x10] sm:$0xf0] }
  0x75   : > { %906 = vmatpush.bf16.msra.mxu3 %v3289_v9  ;;  %v3336_v27 = vor.u32 %v2640_v23, %v2482_v22  ;;  %v3340_v28 = vor.u32 %v2638_v16, %v2476_v21  ;;  %v2470_v29 = vld [vmem:[#allocation9 + $0x8] sm:$0xf]  ;;  %v2635_v32 = vld [vmem:[#allocation9 + $0x4] sm:$0xf]  ;;  %v2464_v33 = vld [vmem:[#allocation9 + $0xc] sm:$0xf0] }
  0x76   : > { %653 = vmatpush.bf16.msra.mxu1 %v2383_v40  ;;  %v3345_v34 = vor.u32 %v2637_v31, %v2470_v29  ;;  %v3348_v35 = vor.u32 %v2635_v32, %v2464_v33  ;;  %v2609_v37 = vld [vmem:[%s3247_s21 + $0x10] sm:$0xff]  ;;  %s3809_s9 = smov (!%p413_p1, %s3142_s9), 1 }
  0x77   : > { %626 = vmatmul.bf16.vlgmr.msra.gmra.mxu0 %v3296_v20  ;;  %s2347_s24 = sshll.u32 %s3809_s9, 3 }
  0x78   : > { %925 = vmatpush.bf16.msrb.mxu0 %v3291_v10  ;;  %907 = vmatmul.bf16.vlgmr.msra.gmra.mxu3 %v3074_v39  ;;  %s416_s30 = scalar_lea.vmem %s3775_s8, %s2347_s24 }
  0x79   : > { %912 = vmatpush.bf16.msrb.mxu3 %v3293_v15  ;;  %681 = vmatpush.bf16.msra.mxu2 %v2399_v61 }
  0x7a   : > { %654 = vmatpush.bf16.msra.mxu1 %v2371_v54 }
  0x7c   : > { %926 = vmatpush.bf16.msrb.mxu0 %v3300_v26 }
  0x7d   : > { %913 = vmatpush.bf16.msrb.mxu3 %v3303_v30  ;;  %655 = vmatmul.bf16.vlgmr.msra.gmra.mxu1 %v3296_v20 }
  0x7e   : > { %994 = vmatpush.bf16.msrb.mxu1 %v3268_v7  ;;  %682 = vmatpush.bf16.msra.mxu2 %v2387_v5 }
  0x80   : > { %927 = vmatpush.bf16.msrb.mxu0 %v3308_v42 }
  0x81   : > { %914 = vmatpush.bf16.msrb.mxu3 %v3311_v45 }
  0x82   : > { %995 = vmatpush.bf16.msrb.mxu1 %v3271_v11  ;;  %683 = vmatpush.bf16.msra.mxu2 %v2375_v25 }
  0x84   : > { %928 = vmatpush.bf16.msrb.mxu0 %v3314_v55 }
  0x85   : > { %915 = vmatpush.bf16.msrb.mxu3 %v3317_v56  ;;  %684 = vmatmul.bf16.vlgmr.msra.gmra.mxu2 %v3296_v20  ;;  %v2610_v20 = vld [vmem:[%s3247_s21 + $0x18] sm:$0xff] }
  0x86   : > { %996 = vmatpush.bf16.msrb.mxu1 %v3274_v17  ;;  %1007 = vmatpush.bf16.msrb.mxu2 %v3293_v15 }
  0x87   : > { %631 = vmatmul.bf16.gmra.mxu0 %v2608_v6 }
  0x88   : > { %929 = vmatpush.bf16.msrb.mxu0 %v3320_v1 }
  0x89   : > { %916 = vmatpush.bf16.msrb.mxu3 %v3324_v2 }
  0x8a   : > { %997 = vmatpush.bf16.msrb.mxu1 %v3277_v24  ;;  %1008 = vmatpush.bf16.msrb.mxu2 %v3303_v30 }
  0x8c   : > { %930 = vmatpush.bf16.msrb.mxu0 %v3329_v13 }
  0x8d   : > { %917 = vmatpush.bf16.msrb.mxu3 %v3333_v14  ;;  %660 = vmatmul.bf16.gmra.mxu1 %v2608_v6 }
  0x8e   : > { %998 = vmatpush.bf16.msrb.mxu1 %v3280_v36  ;;  %1009 = vmatpush.bf16.msrb.mxu2 %v3311_v45 }
  0x90   : > { %931 = vmatpush.bf16.msrb.mxu0 %v3336_v27 }
  0x91   : > { %918 = vmatpush.bf16.msrb.mxu3 %v3340_v28 }
  0x92   : > { %999 = vmatpush.bf16.msrb.mxu1 %v3283_v47  ;;  %1010 = vmatpush.bf16.msrb.mxu2 %v3317_v56 }
  0x94   : > { %932 = vmatpush.bf16.msrb.mxu0 %v3345_v34 }
  0x95   : > { %919 = vmatpush.bf16.msrb.mxu3 %v3348_v35  ;;  %689 = vmatmul.bf16.gmra.mxu2 %v2608_v6 }
  0x96   : > { %1000 = vmatpush.bf16.msrb.mxu1 %v3286_v59  ;;  %1011 = vmatpush.bf16.msrb.mxu2 %v3324_v2 }
  0x97   : > { %636 = vmatmul.bf16.gmra.mxu0 %v2609_v37 }
  0x98   : > { %1090 = vmatpush.bf16.msra.mxu0 %v3268_v7  ;;  %920 = vmatmul.bf16.vlgmr.msrb.gmra.mxu3 %v3074_v39 }
  0x99   : > { %1020 = vmatpush.bf16.msra.mxu3 %v3291_v10 }
  0x9a   : > { %1001 = vmatpush.bf16.msrb.mxu1 %v3289_v9  ;;  %1012 = vmatpush.bf16.msrb.mxu2 %v3333_v14 }
  0x9c   : > { %1091 = vmatpush.bf16.msra.mxu0 %v3271_v11 }
  0x9d   : > { %1021 = vmatpush.bf16.msra.mxu3 %v3300_v26  ;;  %665 = vmatmul.bf16.gmra.mxu1 %v2609_v37 }
  0x9e   : > { %1103 = vmatpush.bf16.msra.mxu1 %v3293_v15  ;;  %1013 = vmatpush.bf16.msrb.mxu2 %v3340_v28 }
  0xa0   : > { %1092 = vmatpush.bf16.msra.mxu0 %v3274_v17 }
  0xa1   : > { %1022 = vmatpush.bf16.msra.mxu3 %v3308_v42 }
  0xa2   : > { %1104 = vmatpush.bf16.msra.mxu1 %v3303_v30  ;;  %1014 = vmatpush.bf16.msrb.mxu2 %v3348_v35 }
  0xa4   : > { %1093 = vmatpush.bf16.msra.mxu0 %v3277_v24 }
  0xa5   : > { %1023 = vmatpush.bf16.msra.mxu3 %v3314_v55  ;;  %694 = vmatmul.bf16.gmra.mxu2 %v2609_v37 }
  0xa6   : > { %1116 = vmatpush.bf16.msra.mxu2 %v3291_v10  ;;  %1105 = vmatpush.bf16.msra.mxu1 %v3311_v45 }
  0xa7   : > { %641 = vmatmul.bf16.gmra.mxu0 %v2610_v20 }
  0xa8   : > { %1094 = vmatpush.bf16.msra.mxu0 %v3280_v36 }
  0xa9   : > { %1024 = vmatpush.bf16.msra.mxu3 %v3320_v1 }
  0xaa   : > { %1117 = vmatpush.bf16.msra.mxu2 %v3300_v26  ;;  %1106 = vmatpush.bf16.msra.mxu1 %v3317_v56 }
  0xac   : > { %1095 = vmatpush.bf16.msra.mxu0 %v3283_v47 }
  0xad   : > { %1025 = vmatpush.bf16.msra.mxu3 %v3329_v13  ;;  %670 = vmatmul.bf16.gmra.mxu1 %v2610_v20 }
  0xae   : > { %1118 = vmatpush.bf16.msra.mxu2 %v3308_v42  ;;  %1107 = vmatpush.bf16.msra.mxu1 %v3324_v2 }
  0xb0   : > { %1096 = vmatpush.bf16.msra.mxu0 %v3286_v59 }
  0xb1   : > { %1026 = vmatpush.bf16.msra.mxu3 %v3336_v27 }
  0xb2   : > { %1119 = vmatpush.bf16.msra.mxu2 %v3314_v55  ;;  %1108 = vmatpush.bf16.msra.mxu1 %v3333_v14 }
  0xb4   : > { %1097 = vmatpush.bf16.msra.mxu0 %v3289_v9 }
  0xb5   : > { %1027 = vmatpush.bf16.msra.mxu3 %v3345_v34  ;;  %699 = vmatmul.bf16.gmra.mxu2 %v2610_v20 }
  0xb6   : > { %1120 = vmatpush.bf16.msra.mxu2 %v3320_v1  ;;  %1109 = vmatpush.bf16.msra.mxu1 %v3340_v28 }
  0xb7   : > { %933 = vmatmul.bf16.vlgmr.msrb.gmra.mxu0 %v3074_v39  ;;  %v458_v39 = vld [vmem:[%s3771_s4] sm:$0x7] }
  0xb8   : > { %1199 = vmatpush.bf16.msrb.mxu0 %v3293_v15  ;;  %v460_v40 = vperm.slane %v458_v39, 0  ;;  %v3425_v57 = vperm.slane %v458_v39, 1  ;;  %v3436_v32 = vperm.slane %v458_v39, 2 }
  0xb9   : > { %1186 = vmatpush.bf16.msrb.mxu3 %v3268_v7 }
  0xba   : > { %1121 = vmatpush.bf16.msra.mxu2 %v3329_v13  ;;  %1110 = vmatpush.bf16.msra.mxu1 %v3348_v35 }
  0xbc   : > { %1200 = vmatpush.bf16.msrb.mxu0 %v3303_v30 }
  0xbd   : > { %1187 = vmatpush.bf16.msrb.mxu3 %v3271_v11 }
  0xbe   : > { %1122 = vmatpush.bf16.msra.mxu2 %v3336_v27 }
  0xc0   : > { %1201 = vmatpush.bf16.msrb.mxu0 %v3311_v45 }
  0xc1   : > { %1188 = vmatpush.bf16.msrb.mxu3 %v3274_v17 }
  0xc2   : > { %1123 = vmatpush.bf16.msra.mxu2 %v3345_v34 }
  0xc4   : > { %1202 = vmatpush.bf16.msrb.mxu0 %v3317_v56 }
  0xc5   : > { %1189 = vmatpush.bf16.msrb.mxu3 %v3277_v24 }
  0xc8   : > { %1203 = vmatpush.bf16.msrb.mxu0 %v3324_v2 }
  0xc9   : > { %1190 = vmatpush.bf16.msrb.mxu3 %v3280_v36 }
  0xcc   : > { %1204 = vmatpush.bf16.msrb.mxu0 %v3333_v14 }
  0xcd   : > { %1191 = vmatpush.bf16.msrb.mxu3 %v3283_v47 }
  0xd0   : > { %1205 = vmatpush.bf16.msrb.mxu0 %v3340_v28 }
  0xd1   : > { %1192 = vmatpush.bf16.msrb.mxu3 %v3286_v59 }
  0xd4   : > { %1206 = vmatpush.bf16.msrb.mxu0 %v3348_v35 }
  0xd5   : > { %1193 = vmatpush.bf16.msrb.mxu3 %v3289_v9 }
  0xf4   : > { %v627_v38 = vpop.f32.mrf.mxu0 }
  0xf5   : > { %v628_v46 = vadd.f32 %v627_v38, %v460_v40 }
  0xfa   : > { %v656_v58 = vpop.f32.mrf.mxu1 }
  0xfb   : > { %v908_v41 = vpop.f32.mrf.mxu3  ;;  %v657_v63 = vadd.f32 %v656_v58, %v3425_v57 }
  0xfc   : > { %v629_v43 = vpop.f32.mrf.mxu0  ;;  %v938_v50 = vadd.f32 %v908_v41, %v628_v46 }
  0xfd   : > { %v3419_v44 = vadd.f32 %v629_v43, %v460_v40 }
  0xfe   : > { %v2556_v52 = vmul.f32 -1.442695, %v938_v50 }
 0x100   : > { %2753 = vpow2.f32 %v2556_v52  ;;  %v3446_v52 = vld [vmem:[%s3772_s5] ss:$0 sm:$0xff] }
 0x103   : > { %v910_v48 = vpop.f32.mrf.mxu3 }
 0x104   : > { %v632_v49 = vpop.f32.mrf.mxu0 }
 0x105   : > { %v3421_v51 = vadd.f32 %v632_v49, %v460_v40 }
 0x106   : > { %v2754_v60 = vpop.eup %2753 }
 0x107   : > { %v942_v0 = vadd.f32 1.0, %v2754_v60 }
 0x108   : > { %v685_v3 = vpop.f32.mrf.mxu2 }
 0x109   : > { %2755 = vrcp.f32 %v942_v0  ;;  %v954_v50 = vand.u32 2147483648, %v942_v0  ;;  %vm948_vm1 = vweird.f32 %v942_v0  ;;  %v952_v39 = vand.u32 2147483647, %v942_v0 }
 0x10b   : > { %vm953_vm3 = vcmp.eq.f32.partialorder %v952_v39, 8.507059e+37 }
 0x10c   : > { %v634_v53 = vpop.f32.mrf.mxu0 }
 0x10d   : > { %v3423_v54 = vadd.f32 %v634_v53, %v460_v40 }
 0x10f   : > { %v2756_v16 = vpop.eup %2755 }
 0x110   : > { %v3432_v19 = vpop.f32.mrf.mxu2  ;;  %v944_v22 = vmul.f32 %v2756_v16, %v942_v0  ;;  %vm949_vm0 = vweird.f32 %v2756_v16 }
 0x111   : > { %vm950_vm2 = vmor %vm948_vm1, %vm949_vm0 }
 0x112   : > { %v945_v31 = vsub.f32 1.0, %v944_v22 }
 0x114   : > { %v637_v61 = vpop.f32.mrf.mxu0  ;;  %v946_v20 = vmul.f32 %v2756_v16, %v945_v31 }
 0x115   : > { %v3427_v62 = vadd.f32 %v637_v61, %v460_v40 }
 0x116   : > { %v947_v49 = vadd.f32 %v2756_v16, %v946_v20 }
 0x118   : > { %v690_v33 = vpop.f32.mrf.mxu2  ;;  %v951_v61 = vsel %vm950_vm2, %v2756_v16, %v947_v49 }
 0x119   : > { %v3439_v37 = vadd.f32 %v690_v33, %v3436_v32 }
 0x11b   : > { %v921_v4 = vpop.f32.mrf.mxu3 }
 0x11c   : > { %v958_v5 = vadd.f32 %v921_v4, %v657_v63  ;;  %v639_v8 = vpop.f32.mrf.mxu0  ;;  %v955_v63 = vor.u32 1.1754944e-38, %v954_v50  ;;  %v686_v4 = vadd.f32 %v685_v3, %v3436_v32 }
 0x11d   : > { %v3430_v12 = vadd.f32 %v639_v8, %v460_v40 }
 0x11e   : > { %v2557_v6 = vmul.f32 -1.442695, %v958_v5 }
 0x120   : > { %2757 = vpow2.f32 %v2557_v6  ;;  %v692_v53 = vpop.f32.mrf.mxu2  ;;  %v956_v6 = vsel %vm953_vm3, %v955_v63, %v951_v61  ;;  %v658_v61 = vpop.f32.mrf.mxu1 }
 0x121   : > { %v3449_v60 = vadd.f32 %v692_v53, %v3436_v32 }
 0x123   : > { %v923_v18 = vpop.f32.mrf.mxu3 }
 0x124   : > { %v642_v25 = vpop.f32.mrf.mxu0 }
 0x125   : > { %v3434_v29 = vadd.f32 %v642_v25, %v460_v40 }
 0x126   : > { %v2758_v21 = vpop.eup %2757 }
 0x127   : > { %v962_v23 = vadd.f32 1.0, %v2758_v21 }
 0x128   : > { %v695_v25 = vpop.f32.mrf.mxu2 }
 0x129   : > { %2759 = vrcp.f32 %v962_v23  ;;  %vm968_vm4 = vweird.f32 %v962_v23  ;;  %v974_v18 = vand.u32 2147483648, %v962_v23  ;;  %v972_v21 = vand.u32 2147483647, %v962_v23 }
 0x12a   : > { %v3454_v16 = vadd.f32 %v695_v25, %v3436_v32  ;;  %v659_v25 = vadd.f32 %v658_v61, %v3425_v57 }
 0x12b   : > { %v975_v33 = vor.u32 1.1754944e-38, %v974_v18  ;;  %vm973_vm7 = vcmp.eq.f32.partialorder %v972_v21, 8.507059e+37 }
 0x12c   : > { %v644_v41 = vpop.f32.mrf.mxu0 }
 0x12d   : > { %v3441_v46 = vadd.f32 %v644_v41, %v460_v40 }
 0x12f   : > { %v2760_v38 = vpop.eup %2759  ;;  %3795 = vst [vmem:[#allocation17_spill] sm:$0xff] %v3441_v46 }
 0x130   : > { %v964_v43 = vmul.f32 %v2760_v38, %v962_v23  ;;  %vm969_vm5 = vweird.f32 %v2760_v38 }
 0x131   : > { %vm970_vm6 = vmor %vm968_vm4, %vm969_vm5 }
 0x132   : > { %v965_v48 = vsub.f32 1.0, %v964_v43 }
 0x134   : > { %v966_v58 = vmul.f32 %v2760_v38, %v965_v48  ;;  %v934_v40 = vpop.f32.mrf.mxu0  ;;  %v697_v48 = vpop.f32.mrf.mxu2 }
 0x135   : > { %v978_v5 = vadd.f32 %v3446_v52, %v934_v40  ;;  %v3457_v39 = vadd.f32 %v697_v48, %v3436_v32  ;;  %v3490_v40 = vpop.f32.mrf.mxu1 }
 0x136   : > { %v967_v8 = vadd.f32 %v2760_v38, %v966_v58 }
 0x137   : > { %v979_v0 = vmul.f32 %v978_v5, %v956_v6 }
 0x138   : > { %v971_v31 = vsel %vm970_vm6, %v2760_v38, %v967_v8 }
 0x139   : > { %v980_v22 = vadd.f32 %v979_v0, %v686_v4  ;;  %v976_v20 = vsel %vm973_vm7, %v975_v33, %v971_v31 }
 0x13a   : > { %v982_v41 = vsub.f32 1.0, %v976_v20  ;;  %v984_v50 = vmul.f32 0.0, %v976_v20 }
 0x13b   : > { %2761 = vtanh.f32 %v980_v22 }
 0x13c   : > { %v936_v3 = vpop.f32.mrf.mxu0  ;;  %v700_v53 = vpop.f32.mrf.mxu2 }
 0x13d   : > { %v3465_v58 = vadd.f32 %v700_v53, %v3436_v32  ;;  %v3492_v63 = vpop.f32.mrf.mxu1 }
 0x13f   : > { %3796 = vst [vmem:[#allocation18_spill] sm:$0xff] %v3465_v58 }
 0x141   : > { %v2762_v43 = vpop.eup %2761 }
 0x142   : > { %v983_v49 = vmul.f32 %v2762_v43, %v982_v41 }
 0x144   : > { %v3459_v23 = vadd.f32 %v984_v50, %v983_v49  ;;  %v3502_v18 = vpop.f32.mrf.mxu2 }
 0x145   : > { %v3494_v4 = vpop.f32.mrf.mxu1  ;;  %3798 = vst [vmem:[#allocation20_spill] sm:$0xff] %v3502_v18 }
 0x146   : > { %v986_v38 = vpack.c.bf16 %v3459_v23, %v3459_v23 }
 0x148   : > { %987 = vst [vmem:[#allocation3] sm:$0xf] %v986_v38  ;;  %1002 = vmatmul.bf16.vlgmr.msrb.gmra.mxu1 %v986_v38  ;;  %1015 = vmatmul.bf16.vlgmr.msrb.gmra.mxu2 %v986_v38 }
 0x149   : > { %1028 = vmatmul.bf16.vlgmr.msra.gmra.mxu3 %v986_v38  ;;  %1212 = vmatpush.bf16.msrb.mxu1 %v3291_v10 }
 0x14a   : > { %1282 = vmatpush.bf16.msrb.mxu2 %v3268_v7  ;;  %1295 = vmatpush.bf16.msra.mxu3 %v3293_v15 }
 0x14d   : > { %1213 = vmatpush.bf16.msrb.mxu1 %v3300_v26  ;;  %v3496_v5 = vpop.f32.mrf.mxu1 }
 0x14e   : > { %1283 = vmatpush.bf16.msrb.mxu2 %v3271_v11  ;;  %1296 = vmatpush.bf16.msra.mxu3 %v3303_v30 }
 0x151   : > { %1214 = vmatpush.bf16.msrb.mxu1 %v3308_v42 }
 0x152   : > { %1284 = vmatpush.bf16.msrb.mxu2 %v3274_v17  ;;  %1297 = vmatpush.bf16.msra.mxu3 %v3311_v45 }
 0x155   : > { %1215 = vmatpush.bf16.msrb.mxu1 %v3314_v55  ;;  %v3498_v6 = vpop.f32.mrf.mxu1 }
 0x156   : > { %1285 = vmatpush.bf16.msrb.mxu2 %v3277_v24  ;;  %1298 = vmatpush.bf16.msra.mxu3 %v3317_v56 }
 0x159   : > { %1216 = vmatpush.bf16.msrb.mxu1 %v3320_v1 }
 0x15a   : > { %1286 = vmatpush.bf16.msrb.mxu2 %v3280_v36  ;;  %1299 = vmatpush.bf16.msra.mxu3 %v3324_v2 }
 0x15d   : > { %1217 = vmatpush.bf16.msrb.mxu1 %v3329_v13  ;;  %v3500_v8 = vpop.f32.mrf.mxu1 }
 0x15e   : > { %1287 = vmatpush.bf16.msrb.mxu2 %v3283_v47  ;;  %1300 = vmatpush.bf16.msra.mxu3 %v3333_v14  ;;  %3797 = vst [vmem:[#allocation19_spill] sm:$0xff] %v3500_v8 }
 0x161   : > { %1218 = vmatpush.bf16.msrb.mxu1 %v3336_v27 }
 0x162   : > { %1288 = vmatpush.bf16.msrb.mxu2 %v3286_v59  ;;  %1301 = vmatpush.bf16.msra.mxu3 %v3340_v28 }
 0x165   : > { %1219 = vmatpush.bf16.msrb.mxu1 %v3345_v34 }
 0x166   : > { %1289 = vmatpush.bf16.msrb.mxu2 %v3289_v9  ;;  %1302 = vmatpush.bf16.msra.mxu3 %v3348_v35 }
 0x1c5   : > { %v1003_v0 = vpop.f32.mrf.mxu1 }
 0x1c6   : > { %v1033_v21 = vadd.f32 %v1003_v0, %v3419_v44 }
 0x1c8   : > { %v2558_v22 = vmul.f32 -1.442695, %v1033_v21 }
 0x1ca   : > { %2763 = vpow2.f32 %v2558_v22 }
 0x1cb   : > { %v1016_v31 = vpop.f32.mrf.mxu2 }
 0x1cc   : > { %v1053_v33 = vadd.f32 %v1016_v31, %v659_v25  ;;  %v1029_v3 = vpop.f32.mrf.mxu3 }
 0x1cd   : > { %v1005_v20 = vpop.f32.mrf.mxu1 }
 0x1ce   : > { %v2559_v41 = vmul.f32 -1.442695, %v1053_v33 }
 0x1d0   : > { %v2764_v43 = vpop.eup %2763  ;;  %2765 = vpow2.f32 %v2559_v41 }
 0x1d1   : > { %v1037_v48 = vadd.f32 1.0, %v2764_v43 }
 0x1d3   : > { %2767 = vrcp.f32 %v1037_v48  ;;  %v1018_v49 = vpop.f32.mrf.mxu2  ;;  %v1049_v21 = vand.u32 2147483648, %v1037_v48  ;;  %v1047_v22 = vand.u32 2147483647, %v1037_v48  ;;  %vm1043_vm9 = vweird.f32 %v1037_v48 }
 0x1d4   : > { %v1031_v50 = vpop.f32.mrf.mxu3  ;;  %v1073_v49 = vadd.f32 %v3446_v52, %v1029_v3 }
 0x1d5   : > { %v1050_v33 = vor.u32 1.1754944e-38, %v1049_v21  ;;  %vm1048_vm11 = vcmp.eq.f32.partialorder %v1047_v22, 8.507059e+37  ;;  %v688_v50 = vadd.f32 %v3432_v19, %v3436_v32 }
 0x1d6   : > { %v2766_v38 = vpop.eup %2765 }
 0x1d7   : > { %v1057_v53 = vadd.f32 1.0, %v2766_v38 }
 0x1d9   : > { %v2768_v18 = vpop.eup %2767  ;;  %2769 = vrcp.f32 %v1057_v53  ;;  %v1067_v8 = vand.u32 2147483647, %v1057_v53  ;;  %vm1063_vm13 = vweird.f32 %v1057_v53 }
 0x1da   : > { %v1039_v44 = vmul.f32 %v2768_v18, %v1037_v48  ;;  %vm1044_vm8 = vweird.f32 %v2768_v18 }
 0x1db   : > { %vm1045_vm10 = vmor %vm1043_vm9, %vm1044_vm8  ;;  %vm1068_vm15 = vcmp.eq.f32.partialorder %v1067_v8, 8.507059e+37 }
 0x1dc   : > { %v1040_v0 = vsub.f32 1.0, %v1039_v44 }
 0x1de   : > { %v1041_v61 = vmul.f32 %v2768_v18, %v1040_v0  ;;  %v1069_v0 = vand.u32 2147483648, %v1057_v53 }
 0x1df   : > { %v2770_v25 = vpop.eup %2769 }
 0x1e0   : > { %v1059_v31 = vmul.f32 %v2770_v25, %v1057_v53  ;;  %v1042_v20 = vadd.f32 %v2768_v18, %v1041_v61  ;;  %vm1064_vm12 = vweird.f32 %v2770_v25  ;;  %v1070_v48 = vor.u32 1.1754944e-38, %v1069_v0 }
 0x1e1   : > { %vm1065_vm14 = vmor %vm1063_vm13, %vm1064_vm12 }
 0x1e2   : > { %v1060_v41 = vsub.f32 1.0, %v1059_v31  ;;  %v1046_v43 = vsel %vm1045_vm10, %v2768_v18, %v1042_v20 }
 0x1e3   : > { %v1051_v38 = vsel %vm1048_vm11, %v1050_v33, %v1046_v43 }
 0x1e4   : > { %v1061_v44 = vmul.f32 %v2770_v25, %v1060_v41  ;;  %v1074_v46 = vmul.f32 %v1073_v49, %v1051_v38 }
 0x1e6   : > { %v1075_v58 = vadd.f32 %v1074_v46, %v688_v50  ;;  %v1062_v61 = vadd.f32 %v2770_v25, %v1061_v44  ;;  %v662_v46 = vadd.f32 %v3490_v40, %v3425_v57 }
 0x1e8   : > { %2771 = vtanh.f32 %v1075_v58  ;;  %v1066_v21 = vsel %vm1065_vm14, %v2770_v25, %v1062_v61 }
 0x1e9   : > { %v1071_v18 = vsel %vm1068_vm15, %v1070_v48, %v1066_v21 }
 0x1ea   : > { %v1077_v22 = vsub.f32 1.0, %v1071_v18  ;;  %v1079_v19 = vmul.f32 %v1071_v18, %v3459_v23 }
 0x1ee   : > { %v2772_v3 = vpop.eup %2771 }
 0x1ef   : > { %v1078_v31 = vmul.f32 %v2772_v3, %v1077_v22 }
 0x1f1   : > { %v3510_v20 = vadd.f32 %v1079_v19, %v1078_v31 }
 0x1f3   : > { %v1081_v33 = vpack.c.bf16 %v3510_v20, %v3510_v20 }
 0x1f5   : > { %1083 = vst [vmem:[#allocation3 + $0x4] sm:$0xf] %v1081_v33  ;;  %1098 = vmatmul.bf16.vlgmr.msra.gmra.mxu0 %v1081_v33  ;;  %1111 = vmatmul.bf16.vlgmr.msra.gmra.mxu1 %v1081_v33 }
 0x1f6   : > { %1124 = vmatmul.bf16.vlgmr.msra.gmra.mxu2 %v1081_v33  ;;  %1308 = vmatpush.bf16.msra.mxu0 %v3291_v10 }
 0x1f7   : > { %1378 = vmatpush.bf16.msra.mxu1 %v3268_v7  ;;  %1391 = vmatpush.bf16.msra.mxu2 %v3293_v15 }
 0x1fa   : > { %1309 = vmatpush.bf16.msra.mxu0 %v3300_v26 }
 0x1fb   : > { %1379 = vmatpush.bf16.msra.mxu1 %v3271_v11  ;;  %1392 = vmatpush.bf16.msra.mxu2 %v3303_v30 }
 0x1fe   : > { %1310 = vmatpush.bf16.msra.mxu0 %v3308_v42 }
 0x1ff   : > { %1380 = vmatpush.bf16.msra.mxu1 %v3274_v17  ;;  %1393 = vmatpush.bf16.msra.mxu2 %v3311_v45 }
 0x202   : > { %1311 = vmatpush.bf16.msra.mxu0 %v3314_v55 }
 0x203   : > { %1381 = vmatpush.bf16.msra.mxu1 %v3277_v24  ;;  %1394 = vmatpush.bf16.msra.mxu2 %v3317_v56 }
 0x206   : > { %1312 = vmatpush.bf16.msra.mxu0 %v3320_v1 }
 0x207   : > { %1382 = vmatpush.bf16.msra.mxu1 %v3280_v36  ;;  %1395 = vmatpush.bf16.msra.mxu2 %v3324_v2 }
 0x20a   : > { %1313 = vmatpush.bf16.msra.mxu0 %v3329_v13 }
 0x20b   : > { %1383 = vmatpush.bf16.msra.mxu1 %v3283_v47  ;;  %1396 = vmatpush.bf16.msra.mxu2 %v3333_v14 }
 0x20e   : > { %1314 = vmatpush.bf16.msra.mxu0 %v3336_v27 }
 0x20f   : > { %1384 = vmatpush.bf16.msra.mxu1 %v3286_v59  ;;  %1397 = vmatpush.bf16.msra.mxu2 %v3340_v28 }
 0x212   : > { %1315 = vmatpush.bf16.msra.mxu0 %v3345_v34 }
 0x213   : > { %1385 = vmatpush.bf16.msra.mxu1 %v3289_v9  ;;  %1398 = vmatpush.bf16.msra.mxu2 %v3348_v35 }
 0x272   : > { %v1099_v23 = vpop.f32.mrf.mxu0  ;;  %v1112_v58 = vpop.f32.mrf.mxu1 }
 0x273   : > { %v1129_v8 = vadd.f32 %v1099_v23, %v3421_v51  ;;  %v1149_v53 = vadd.f32 %v1112_v58, %v662_v46 }
 0x275   : > { %v2560_v25 = vmul.f32 -1.442695, %v1129_v8  ;;  %v2561_v41 = vmul.f32 -1.442695, %v1149_v53 }
 0x277   : > { %2773 = vpow2.f32 %v2560_v25 }
 0x278   : > { %2775 = vpow2.f32 %v2561_v41 }
 0x279   : > { %v1125_v43 = vpop.f32.mrf.mxu2 }
 0x27a   : > { %v1101_v49 = vpop.f32.mrf.mxu0  ;;  %v1114_v50 = vpop.f32.mrf.mxu1  ;;  %v1169_v53 = vadd.f32 %v3446_v52, %v1125_v43 }
 0x27d   : > { %v2774_v38 = vpop.eup %2773 }
 0x27e   : > { %v2776_v44 = vpop.eup %2775  ;;  %v1133_v0 = vadd.f32 1.0, %v2774_v38 }
 0x27f   : > { %v1153_v61 = vadd.f32 1.0, %v2776_v44 }
 0x280   : > { %2777 = vrcp.f32 %v1133_v0  ;;  %v1145_v31 = vand.u32 2147483648, %v1133_v0  ;;  %v1143_v33 = vand.u32 2147483647, %v1133_v0  ;;  %vm1139_vm1 = vweird.f32 %v1133_v0 }
 0x281   : > { %2779 = vrcp.f32 %v1153_v61  ;;  %v1127_v48 = vpop.f32.mrf.mxu2  ;;  %v1165_v49 = vand.u32 2147483648, %v1153_v61  ;;  %vm1159_vm5 = vweird.f32 %v1153_v61  ;;  %v1163_v38 = vand.u32 2147483647, %v1153_v61 }
 0x282   : > { %v1146_v58 = vor.u32 1.1754944e-38, %v1145_v31  ;;  %vm1144_vm3 = vcmp.eq.f32.partialorder %v1143_v33, 8.507059e+37 }
 0x283   : > { %vm1164_vm7 = vcmp.eq.f32.partialorder %v1163_v38, 8.507059e+37 }
 0x286   : > { %v2778_v40 = vpop.eup %2777 }
 0x287   : > { %v2780_v21 = vpop.eup %2779  ;;  %v1135_v18 = vmul.f32 %v2778_v40, %v1133_v0  ;;  %vm1140_vm0 = vweird.f32 %v2778_v40 }
 0x288   : > { %v1155_v22 = vmul.f32 %v2780_v21, %v1153_v61  ;;  %vm1141_vm2 = vmor %vm1139_vm1, %vm1140_vm0  ;;  %vm1160_vm4 = vweird.f32 %v2780_v21 }
 0x289   : > { %v1136_v51 = vsub.f32 1.0, %v1135_v18  ;;  %vm1161_vm6 = vmor %vm1159_vm5, %vm1160_vm4  ;;  %v1166_v18 = vor.u32 1.1754944e-38, %v1165_v49 }
 0x28a   : > { %v1156_v3 = vsub.f32 1.0, %v1155_v22 }
 0x28b   : > { %v1137_v19 = vmul.f32 %v2778_v40, %v1136_v51 }
 0x28c   : > { %v1157_v46 = vmul.f32 %v2780_v21, %v1156_v3 }
 0x28d   : > { %v1138_v23 = vadd.f32 %v2778_v40, %v1137_v19 }
 0x28e   : > { %v1158_v41 = vadd.f32 %v2780_v21, %v1157_v46 }
 0x28f   : > { %v1142_v8 = vsel %vm1141_vm2, %v2778_v40, %v1138_v23 }
 0x290   : > { %v1147_v25 = vsel %vm1144_vm3, %v1146_v58, %v1142_v8  ;;  %v1162_v48 = vsel %vm1161_vm6, %v2780_v21, %v1158_v41 }
 0x291   : > { %v1170_v50 = vmul.f32 %v1169_v53, %v1147_v25  ;;  %v1167_v0 = vsel %vm1164_vm7, %v1166_v18, %v1162_v48 }
 0x292   : > { %v1173_v22 = vsub.f32 1.0, %v1167_v0  ;;  %v1175_v43 = vmul.f32 %v1167_v0, %v3510_v20 }
 0x293   : > { %v1171_v44 = vadd.f32 %v1170_v50, %v3439_v37  ;;  %v664_v37 = vadd.f32 %v3492_v63, %v3425_v57 }
 0x295   : > { %2781 = vtanh.f32 %v1171_v44 }
 0x29b   : > { %v2782_v40 = vpop.eup %2781 }
 0x29c   : > { %v1174_v51 = vmul.f32 %v2782_v40, %v1173_v22 }
 0x29e   : > { %v3544_v3 = vadd.f32 %v1175_v43, %v1174_v51 }
 0x2a0   : > { %v1177_v31 = vpack.c.bf16 %v3544_v3, %v3544_v3 }
 0x2a2   : > { %1179 = vst [vmem:[#allocation3 + $0x8] sm:$0xf] %v1177_v31  ;;  %1194 = vmatmul.bf16.vlgmr.msrb.gmra.mxu3 %v1177_v31  ;;  %1207 = vmatmul.bf16.vlgmr.msrb.gmra.mxu0 %v1177_v31 }
 0x2a3   : > { %1220 = vmatmul.bf16.vlgmr.msrb.gmra.mxu1 %v1177_v31  ;;  %1404 = vmatpush.bf16.msrb.mxu3 %v3291_v10 }
 0x2a4   : > { %1474 = vmatpush.bf16.msrb.mxu0 %v3268_v7  ;;  %1487 = vmatpush.bf16.msrb.mxu1 %v3293_v15 }
 0x2a7   : > { %1405 = vmatpush.bf16.msrb.mxu3 %v3300_v26 }
 0x2a8   : > { %1475 = vmatpush.bf16.msrb.mxu0 %v3271_v11  ;;  %1488 = vmatpush.bf16.msrb.mxu1 %v3303_v30 }
 0x2ab   : > { %1406 = vmatpush.bf16.msrb.mxu3 %v3308_v42 }
 0x2ac   : > { %1476 = vmatpush.bf16.msrb.mxu0 %v3274_v17  ;;  %1489 = vmatpush.bf16.msrb.mxu1 %v3311_v45 }
 0x2af   : > { %1407 = vmatpush.bf16.msrb.mxu3 %v3314_v55 }
 0x2b0   : > { %1477 = vmatpush.bf16.msrb.mxu0 %v3277_v24  ;;  %1490 = vmatpush.bf16.msrb.mxu1 %v3317_v56 }
 0x2b3   : > { %1408 = vmatpush.bf16.msrb.mxu3 %v3320_v1 }
 0x2b4   : > { %1478 = vmatpush.bf16.msrb.mxu0 %v3280_v36  ;;  %1491 = vmatpush.bf16.msrb.mxu1 %v3324_v2 }
 0x2b7   : > { %1409 = vmatpush.bf16.msrb.mxu3 %v3329_v13 }
 0x2b8   : > { %1479 = vmatpush.bf16.msrb.mxu0 %v3283_v47  ;;  %1492 = vmatpush.bf16.msrb.mxu1 %v3333_v14 }
 0x2bb   : > { %1410 = vmatpush.bf16.msrb.mxu3 %v3336_v27 }
 0x2bc   : > { %1480 = vmatpush.bf16.msrb.mxu0 %v3286_v59  ;;  %1493 = vmatpush.bf16.msrb.mxu1 %v3340_v28 }
 0x2bf   : > { %1411 = vmatpush.bf16.msrb.mxu3 %v3345_v34 }
 0x2c0   : > { %1481 = vmatpush.bf16.msrb.mxu0 %v3289_v9  ;;  %1494 = vmatpush.bf16.msrb.mxu1 %v3348_v35 }
 0x31f   : > { %v1208_v20 = vpop.f32.mrf.mxu0 }
 0x320   : > { %v1245_v61 = vadd.f32 %v1208_v20, %v664_v37  ;;  %v1221_v21 = vpop.f32.mrf.mxu1 }
 0x321   : > { %v1265_v37 = vadd.f32 %v3446_v52, %v1221_v21 }
 0x322   : > { %v2563_v19 = vmul.f32 -1.442695, %v1245_v61 }
 0x324   : > { %2783 = vpow2.f32 %v2563_v19 }
 0x325   : > { %v1195_v33 = vpop.f32.mrf.mxu3 }
 0x326   : > { %v1225_v46 = vadd.f32 %v1195_v33, %v3423_v54 }
 0x327   : > { %v1210_v23 = vpop.f32.mrf.mxu0 }
 0x328   : > { %v2562_v58 = vmul.f32 -1.442695, %v1225_v46  ;;  %v1223_v8 = vpop.f32.mrf.mxu1 }
 0x32a   : > { %v2784_v53 = vpop.eup %2783  ;;  %2785 = vpow2.f32 %v2562_v58 }
 0x32b   : > { %v1249_v25 = vadd.f32 1.0, %v2784_v53 }
 0x32d   : > { %v1197_v41 = vpop.f32.mrf.mxu3  ;;  %2787 = vrcp.f32 %v1249_v25  ;;  %v1261_v33 = vand.u32 2147483648, %v1249_v25  ;;  %vm1255_vm13 = vweird.f32 %v1249_v25  ;;  %v1259_v23 = vand.u32 2147483647, %v1249_v25 }
 0x32f   : > { %v1262_v53 = vor.u32 1.1754944e-38, %v1261_v33  ;;  %vm1260_vm15 = vcmp.eq.f32.partialorder %v1259_v23, 8.507059e+37 }
 0x330   : > { %v2786_v49 = vpop.eup %2785 }
 0x331   : > { %v1229_v50 = vadd.f32 1.0, %v2786_v49 }
 0x333   : > { %2789 = vrcp.f32 %v1229_v50  ;;  %v2788_v63 = vpop.eup %2787  ;;  %v1241_v22 = vand.u32 2147483648, %v1229_v50  ;;  %v1239_v54 = vand.u32 2147483647, %v1229_v50  ;;  %vm1235_vm9 = vweird.f32 %v1229_v50 }
 0x334   : > { %v1251_v38 = vmul.f32 %v2788_v63, %v1249_v25  ;;  %vm1256_vm12 = vweird.f32 %v2788_v63 }
 0x335   : > { %v1242_v31 = vor.u32 1.1754944e-38, %v1241_v22  ;;  %vm1240_vm11 = vcmp.eq.f32.partialorder %v1239_v54, 8.507059e+37  ;;  %vm1257_vm14 = vmor %vm1255_vm13, %vm1256_vm12 }
 0x336   : > { %v1252_v18 = vsub.f32 1.0, %v1251_v38 }
 0x338   : > { %v1253_v51 = vmul.f32 %v2788_v63, %v1252_v18 }
 0x339   : > { %v2790_v44 = vpop.eup %2789 }
 0x33a   : > { %v1231_v48 = vmul.f32 %v2790_v44, %v1229_v50  ;;  %vm1236_vm8 = vweird.f32 %v2790_v44  ;;  %v1254_v19 = vadd.f32 %v2788_v63, %v1253_v51 }
 0x33b   : > { %vm1237_vm10 = vmor %vm1235_vm9, %vm1236_vm8 }
 0x33c   : > { %v1232_v0 = vsub.f32 1.0, %v1231_v48  ;;  %v1258_v8 = vsel %vm1257_vm14, %v2788_v63, %v1254_v19 }
 0x33d   : > { %v1263_v41 = vsel %vm1260_vm15, %v1262_v53, %v1258_v8 }
 0x33e   : > { %v1233_v40 = vmul.f32 %v2790_v44, %v1232_v0  ;;  %v1269_v49 = vsub.f32 1.0, %v1263_v41  ;;  %v1271_v38 = vmul.f32 %v1263_v41, %v3544_v3 }
 0x340   : > { %v1234_v43 = vadd.f32 %v2790_v44, %v1233_v40 }
 0x342   : > { %v1238_v20 = vsel %vm1237_vm10, %v2790_v44, %v1234_v43 }
 0x343   : > { %v1243_v61 = vsel %vm1240_vm11, %v1242_v31, %v1238_v20 }
 0x344   : > { %v1266_v46 = vmul.f32 %v1265_v37, %v1243_v61 }
 0x346   : > { %v1267_v58 = vadd.f32 %v1266_v46, %v3449_v60 }
 0x348   : > { %2791 = vtanh.f32 %v1267_v58 }
 0x34e   : > { %v2792_v50 = vpop.eup %2791 }
 0x34f   : > { %v1270_v21 = vmul.f32 %v2792_v50, %v1269_v49 }
 0x351   : > { %v3578_v44 = vadd.f32 %v1271_v38, %v1270_v21 }
 0x353   : > { %v1273_v48 = vpack.c.bf16 %v3578_v44, %v3578_v44 }
 0x355   : > { %1275 = vst [vmem:[#allocation3 + $0xc] sm:$0xf] %v1273_v48  ;;  %1290 = vmatmul.bf16.vlgmr.msrb.gmra.mxu2 %v1273_v48  ;;  %1303 = vmatmul.bf16.vlgmr.msra.gmra.mxu3 %v1273_v48 }
 0x356   : > { %1316 = vmatmul.bf16.vlgmr.msra.gmra.mxu0 %v1273_v48  ;;  %1500 = vmatpush.bf16.msrb.mxu2 %v3291_v10 }
 0x357   : > { %1570 = vmatpush.bf16.msra.mxu3 %v3268_v7  ;;  %1583 = vmatpush.bf16.msra.mxu0 %v3293_v15 }
 0x35a   : > { %1501 = vmatpush.bf16.msrb.mxu2 %v3300_v26 }
 0x35b   : > { %1571 = vmatpush.bf16.msra.mxu3 %v3271_v11  ;;  %1584 = vmatpush.bf16.msra.mxu0 %v3303_v30  ;;  %v667_v11 = vadd.f32 %v3494_v4, %v3425_v57 }
 0x35e   : > { %1502 = vmatpush.bf16.msrb.mxu2 %v3308_v42 }
 0x35f   : > { %1572 = vmatpush.bf16.msra.mxu3 %v3274_v17  ;;  %1585 = vmatpush.bf16.msra.mxu0 %v3311_v45 }
 0x362   : > { %1503 = vmatpush.bf16.msrb.mxu2 %v3314_v55 }
 0x363   : > { %1573 = vmatpush.bf16.msra.mxu3 %v3277_v24  ;;  %1586 = vmatpush.bf16.msra.mxu0 %v3317_v56 }
 0x366   : > { %1504 = vmatpush.bf16.msrb.mxu2 %v3320_v1 }
 0x367   : > { %1574 = vmatpush.bf16.msra.mxu3 %v3280_v36  ;;  %1587 = vmatpush.bf16.msra.mxu0 %v3324_v2 }
 0x36a   : > { %1505 = vmatpush.bf16.msrb.mxu2 %v3329_v13 }
 0x36b   : > { %1575 = vmatpush.bf16.msra.mxu3 %v3283_v47  ;;  %1588 = vmatpush.bf16.msra.mxu0 %v3333_v14 }
 0x36e   : > { %1506 = vmatpush.bf16.msrb.mxu2 %v3336_v27 }
 0x36f   : > { %1576 = vmatpush.bf16.msra.mxu3 %v3286_v59  ;;  %1589 = vmatpush.bf16.msra.mxu0 %v3340_v28 }
 0x372   : > { %1507 = vmatpush.bf16.msrb.mxu2 %v3345_v34 }
 0x373   : > { %1577 = vmatpush.bf16.msra.mxu3 %v3289_v9  ;;  %1590 = vmatpush.bf16.msra.mxu0 %v3348_v35 }
 0x3d3   : > { %v1317_v7 = vpop.f32.mrf.mxu0 }
 0x3d4   : > { %v1361_v51 = vadd.f32 %v3446_v52, %v1317_v7 }
 0x3d8   : > { %v1291_v17 = vpop.f32.mrf.mxu2  ;;  %v1304_v24 = vpop.f32.mrf.mxu3 }
 0x3d9   : > { %v1321_v36 = vadd.f32 %v1291_v17, %v3427_v62  ;;  %v1341_v47 = vadd.f32 %v1304_v24, %v667_v11 }
 0x3db   : > { %v2564_v15 = vmul.f32 -1.442695, %v1321_v36  ;;  %v2565_v30 = vmul.f32 -1.442695, %v1341_v47  ;;  %v1319_v59 = vpop.f32.mrf.mxu0 }
 0x3dd   : > { %2793 = vpow2.f32 %v2564_v15 }
 0x3de   : > { %2795 = vpow2.f32 %v2565_v30 }
 0x3e0   : > { %v1293_v45 = vpop.f32.mrf.mxu2  ;;  %v1306_v56 = vpop.f32.mrf.mxu3 }
 0x3e3   : > { %v2794_v2 = vpop.eup %2793 }
 0x3e4   : > { %v2796_v9 = vpop.eup %2795  ;;  %v1325_v14 = vadd.f32 1.0, %v2794_v2 }
 0x3e5   : > { %v1345_v28 = vadd.f32 1.0, %v2796_v9 }
 0x3e6   : > { %2797 = vrcp.f32 %v1325_v14  ;;  %v1337_v62 = vand.u32 2147483648, %v1325_v14  ;;  %v1335_v0 = vand.u32 2147483647, %v1325_v14  ;;  %vm1331_vm1 = vweird.f32 %v1325_v14 }
 0x3e7   : > { %2799 = vrcp.f32 %v1345_v28  ;;  %v1357_v61 = vand.u32 2147483648, %v1345_v28  ;;  %vm1351_vm5 = vweird.f32 %v1345_v28  ;;  %v1355_v19 = vand.u32 2147483647, %v1345_v28 }
 0x3e8   : > { %v1338_v54 = vor.u32 1.1754944e-38, %v1337_v62  ;;  %vm1336_vm3 = vcmp.eq.f32.partialorder %v1335_v0, 8.507059e+37 }
 0x3e9   : > { %v1358_v23 = vor.u32 1.1754944e-38, %v1357_v61  ;;  %vm1356_vm7 = vcmp.eq.f32.partialorder %v1355_v19, 8.507059e+37 }
 0x3ec   : > { %v2798_v35 = vpop.eup %2797 }
 0x3ed   : > { %v2800_v60 = vpop.eup %2799  ;;  %v1327_v4 = vmul.f32 %v2798_v35, %v1325_v14  ;;  %vm1332_vm0 = vweird.f32 %v2798_v35 }
 0x3ee   : > { %v1347_v3 = vmul.f32 %v2800_v60, %v1345_v28  ;;  %vm1333_vm2 = vmor %vm1331_vm1, %vm1332_vm0  ;;  %vm1352_vm4 = vweird.f32 %v2800_v60 }
 0x3ef   : > { %v1328_v25 = vsub.f32 1.0, %v1327_v4  ;;  %vm1353_vm6 = vmor %vm1351_vm5, %vm1352_vm4 }
 0x3f0   : > { %v1348_v63 = vsub.f32 1.0, %v1347_v3 }
 0x3f1   : > { %v1329_v18 = vmul.f32 %v2798_v35, %v1328_v25 }
 0x3f2   : > { %v1349_v22 = vmul.f32 %v2800_v60, %v1348_v63 }
 0x3f3   : > { %v1330_v40 = vadd.f32 %v2798_v35, %v1329_v18 }
 0x3f4   : > { %v1350_v37 = vadd.f32 %v2800_v60, %v1349_v22 }
 0x3f5   : > { %v1334_v43 = vsel %vm1333_vm2, %v2798_v35, %v1330_v40 }
 0x3f6   : > { %v1339_v31 = vsel %vm1336_vm3, %v1338_v54, %v1334_v43  ;;  %v1354_v46 = vsel %vm1353_vm6, %v2800_v60, %v1350_v37 }
 0x3f7   : > { %v1362_v20 = vmul.f32 %v1361_v51, %v1339_v31  ;;  %v1359_v58 = vsel %vm1356_vm7, %v1358_v23, %v1354_v46 }
 0x3f8   : > { %v1365_v8 = vsub.f32 1.0, %v1359_v58  ;;  %v1367_v49 = vmul.f32 %v1359_v58, %v3578_v44 }
 0x3f9   : > { %v1363_v33 = vadd.f32 %v1362_v20, %v3454_v16 }
 0x3fb   : > { %2801 = vtanh.f32 %v1363_v33 }
 0x401   : > { %v2802_v53 = vpop.eup %2801 }
 0x402   : > { %v1366_v41 = vmul.f32 %v2802_v53, %v1365_v8 }
 0x404   : > { %v3612_v50 = vadd.f32 %v1367_v49, %v1366_v41 }
 0x406   : > { %v1369_v21 = vpack.c.bf16 %v3612_v50, %v3612_v50 }
 0x408   : > { %1371 = vst [vmem:[#allocation3 + $0x10] sm:$0xf] %v1369_v21  ;;  %1386 = vmatmul.bf16.vlgmr.msra.gmra.mxu1 %v1369_v21  ;;  %1399 = vmatmul.bf16.vlgmr.msra.gmra.mxu2 %v1369_v21 }
 0x409   : > { %1412 = vmatmul.bf16.vlgmr.msrb.gmra.mxu3 %v1369_v21  ;;  %1596 = vmatpush.bf16.msra.mxu1 %v3291_v10  ;;  %v669_v10 = vadd.f32 %v3496_v5, %v3425_v57 }
 0x40d   : > { %1597 = vmatpush.bf16.msra.mxu1 %v3300_v26 }
 0x411   : > { %1598 = vmatpush.bf16.msra.mxu1 %v3308_v42 }
 0x415   : > { %1599 = vmatpush.bf16.msra.mxu1 %v3314_v55 }
 0x419   : > { %1600 = vmatpush.bf16.msra.mxu1 %v3320_v1 }
 0x41d   : > { %1601 = vmatpush.bf16.msra.mxu1 %v3329_v13 }
 0x421   : > { %1602 = vmatpush.bf16.msra.mxu1 %v3336_v27 }
 0x425   : > { %1603 = vmatpush.bf16.msra.mxu1 %v3345_v34 }
 0x485   : > { %v1387_v16 = vpop.f32.mrf.mxu1 }
 0x486   : > { %v1417_v38 = vadd.f32 %v1387_v16, %v3430_v12 }
 0x488   : > { %v2566_v44 = vmul.f32 -1.442695, %v1417_v38 }
 0x48a   : > { %2803 = vpow2.f32 %v2566_v44 }
 0x48b   : > { %v1400_v26 = vpop.f32.mrf.mxu2 }
 0x48c   : > { %v1437_v42 = vadd.f32 %v1400_v26, %v669_v10  ;;  %v1413_v48 = vpop.f32.mrf.mxu3 }
 0x48d   : > { %v1389_v55 = vpop.f32.mrf.mxu1  ;;  %v1457_v14 = vadd.f32 %v3446_v52, %v1413_v48 }
 0x48e   : > { %v2567_v7 = vmul.f32 -1.442695, %v1437_v42 }
 0x490   : > { %v2804_v1 = vpop.eup %2803  ;;  %2805 = vpow2.f32 %v2567_v7 }
 0x491   : > { %v1421_v13 = vadd.f32 1.0, %v2804_v1 }
 0x493   : > { %2807 = vrcp.f32 %v1421_v13  ;;  %v1402_v27 = vpop.f32.mrf.mxu2  ;;  %v1433_v47 = vand.u32 2147483648, %v1421_v13  ;;  %v1431_v15 = vand.u32 2147483647, %v1421_v13  ;;  %vm1427_vm9 = vweird.f32 %v1421_v13 }
 0x494   : > { %v1415_v11 = vpop.f32.mrf.mxu3 }
 0x495   : > { %v1434_v56 = vor.u32 1.1754944e-38, %v1433_v47  ;;  %vm1432_vm11 = vcmp.eq.f32.partialorder %v1431_v15, 8.507059e+37 }
 0x496   : > { %v2806_v34 = vpop.eup %2805 }
 0x497   : > { %v1441_v17 = vadd.f32 1.0, %v2806_v34 }
 0x499   : > { %v2808_v24 = vpop.eup %2807  ;;  %2809 = vrcp.f32 %v1441_v17  ;;  %v1453_v60 = vand.u32 2147483648, %v1441_v17  ;;  %v1451_v3 = vand.u32 2147483647, %v1441_v17  ;;  %vm1447_vm13 = vweird.f32 %v1441_v17 }
 0x49a   : > { %v1423_v12 = vmul.f32 %v2808_v24, %v1421_v13  ;;  %vm1428_vm8 = vweird.f32 %v2808_v24 }
 0x49b   : > { %vm1429_vm10 = vmor %vm1427_vm9, %vm1428_vm8  ;;  %v1454_v63 = vor.u32 1.1754944e-38, %v1453_v60  ;;  %vm1452_vm15 = vcmp.eq.f32.partialorder %v1451_v3, 8.507059e+37 }
 0x49c   : > { %v1424_v36 = vsub.f32 1.0, %v1423_v12 }
 0x49e   : > { %v1425_v5 = vmul.f32 %v2808_v24, %v1424_v36  ;;  %v3799_v36 = vld [vmem:[#allocation18_spill] sm:$0xff] }
 0x49f   : > { %v2810_v30 = vpop.eup %2809 }
 0x4a0   : > { %v1443_v59 = vmul.f32 %v2810_v30, %v1441_v17  ;;  %v1426_v45 = vadd.f32 %v2808_v24, %v1425_v5  ;;  %vm1448_vm12 = vweird.f32 %v2810_v30 }
 0x4a1   : > { %vm1449_vm14 = vmor %vm1447_vm13, %vm1448_vm12 }
 0x4a2   : > { %v1444_v2 = vsub.f32 1.0, %v1443_v59  ;;  %v1430_v9 = vsel %vm1429_vm10, %v2808_v24, %v1426_v45 }
 0x4a3   : > { %v1435_v28 = vsel %vm1432_vm11, %v1434_v56, %v1430_v9 }
 0x4a4   : > { %v1445_v35 = vmul.f32 %v2810_v30, %v1444_v2  ;;  %v1458_v4 = vmul.f32 %v1457_v14, %v1435_v28  ;;  %v3800_v14 = vld [vmem:[#allocation19_spill] sm:$0xff] }
 0x4a5   : > { %v674_v28 = vadd.f32 %v3800_v14, %v3425_v57 }
 0x4a6   : > { %v1459_v25 = vadd.f32 %v1458_v4, %v3457_v39  ;;  %v1446_v62 = vadd.f32 %v2810_v30, %v1445_v35  ;;  %v672_v39 = vadd.f32 %v3498_v6, %v3425_v57 }
 0x4a8   : > { %2811 = vtanh.f32 %v1459_v25  ;;  %v1450_v18 = vsel %vm1449_vm14, %v2810_v30, %v1446_v62  ;;  %v3801_v62 = vld [vmem:[#allocation17_spill] sm:$0xff] }
 0x4a9   : > { %v1455_v0 = vsel %vm1452_vm15, %v1454_v63, %v1450_v18 }
 0x4aa   : > { %v1461_v22 = vsub.f32 1.0, %v1455_v0  ;;  %v1463_v51 = vmul.f32 %v1455_v0, %v3612_v50 }
 0x4ae   : > { %v2812_v40 = vpop.eup %2811 }
 0x4af   : > { %v1462_v54 = vmul.f32 %v2812_v40, %v1461_v22 }
 0x4b1   : > { %v1464_v43 = vadd.f32 %v1463_v51, %v1462_v54 }
 0x4b3   : > { %v1465_v31 = vpack.c.bf16 %v1464_v43, %v1464_v43 }
 0x4b5   : > { %1467 = vst [vmem:[#allocation3 + $0x14] sm:$0xf] %v1465_v31  ;;  %1482 = vmatmul.bf16.vlgmr.msrb.gmra.mxu0 %v1465_v31  ;;  %1495 = vmatmul.bf16.vlgmr.msrb.gmra.mxu1 %v1465_v31 }
 0x4b6   : > { %1508 = vmatmul.bf16.vlgmr.msrb.gmra.mxu2 %v1465_v31  ;;  %v2666_v31 = vld [vmem:[#allocation11 + $0x38] sm:$0xff] }
 0x4b7   : > { %1833 = vmatpush.bf16.msra.mxu2 %v2666_v31 }
 0x532   : > { %v1483_v37 = vpop.f32.mrf.mxu0  ;;  %v1496_v20 = vpop.f32.mrf.mxu1 }
 0x533   : > { %v1513_v61 = vadd.f32 %v1483_v37, %v3434_v29  ;;  %v1533_v19 = vadd.f32 %v1496_v20, %v672_v39  ;;  %v2665_v37 = vld [vmem:[#allocation11 + $0x30] sm:$0xff]  ;;  %v2664_v20 = vld [vmem:[#allocation11 + $0x28] sm:$0xff] }
 0x534   : > { %1834 = vmatpush.bf16.msra.mxu2 %v2665_v37 }
 0x535   : > { %v2568_v33 = vmul.f32 -1.442695, %v1513_v61  ;;  %v2569_v46 = vmul.f32 -1.442695, %v1533_v19 }
 0x537   : > { %2813 = vpow2.f32 %v2568_v33 }
 0x538   : > { %2815 = vpow2.f32 %v2569_v46  ;;  %1835 = vmatpush.bf16.msra.mxu2 %v2664_v20  ;;  %v2663_v46 = vld [vmem:[#allocation11 + $0x20] sm:$0xff] }
 0x539   : > { %v1509_v23 = vpop.f32.mrf.mxu2 }
 0x53a   : > { %v1485_v58 = vpop.f32.mrf.mxu0  ;;  %v1498_v8 = vpop.f32.mrf.mxu1  ;;  %v1553_v27 = vadd.f32 %v3446_v52, %v1509_v23 }
 0x53c   : > { %1836 = vmatpush.bf16.msra.mxu2 %v2663_v46 }
 0x53d   : > { %v2814_v53 = vpop.eup %2813 }
 0x53e   : > { %v2816_v41 = vpop.eup %2815  ;;  %v1517_v49 = vadd.f32 1.0, %v2814_v53 }
 0x53f   : > { %v1537_v50 = vadd.f32 1.0, %v2816_v41 }
 0x540   : > { %2817 = vrcp.f32 %v1517_v49  ;;  %v1529_v26 = vand.u32 2147483648, %v1517_v49  ;;  %v1527_v48 = vand.u32 2147483647, %v1517_v49  ;;  %vm1523_vm1 = vweird.f32 %v1517_v49 }
 0x541   : > { %2819 = vrcp.f32 %v1537_v50  ;;  %v1511_v21 = vpop.f32.mrf.mxu2  ;;  %v1549_v17 = vand.u32 2147483648, %v1537_v50  ;;  %vm1543_vm5 = vweird.f32 %v1537_v50  ;;  %v1547_v12 = vand.u32 2147483647, %v1537_v50 }
 0x542   : > { %v1530_v1 = vor.u32 1.1754944e-38, %v1529_v26  ;;  %vm1528_vm3 = vcmp.eq.f32.partialorder %v1527_v48, 8.507059e+37 }
 0x543   : > { %v1550_v15 = vor.u32 1.1754944e-38, %v1549_v17  ;;  %vm1548_vm7 = vcmp.eq.f32.partialorder %v1547_v12, 8.507059e+37 }
 0x546   : > { %v2818_v6 = vpop.eup %2817 }
 0x547   : > { %v2820_v16 = vpop.eup %2819  ;;  %v1519_v38 = vmul.f32 %v2818_v6, %v1517_v49  ;;  %vm1524_vm0 = vweird.f32 %v2818_v6  ;;  %v2662_v49 = vld [vmem:[#allocation11 + $0x18] sm:$0xff] }
 0x548   : > { %v1539_v44 = vmul.f32 %v2820_v16, %v1537_v50  ;;  %vm1525_vm2 = vmor %vm1523_vm1, %vm1524_vm0  ;;  %vm1544_vm4 = vweird.f32 %v2820_v16  ;;  %1837 = vmatpush.bf16.msra.mxu2 %v2662_v49  ;;  %vm1669_vm0 = vcmask 1047556   ;;  %vm1982_vm1 = vcmask 64512  }
 0x549   : > { %v1520_v29 = vsub.f32 1.0, %v1519_v38  ;;  %vm1545_vm6 = vmor %vm1543_vm5, %vm1544_vm4  ;;  %vm2192_vm4 = vcmask 1042434   ;;  %vm2194_vm5 = vcmask 1043459  }
 0x54a   : > { %v1540_v10 = vsub.f32 1.0, %v1539_v44 }
 0x54b   : > { %v1521_v42 = vmul.f32 %v2818_v6, %v1520_v29  ;;  %v2661_v29 = vld [vmem:[#allocation11 + $0x10] sm:$0xff] }
 0x54c   : > { %v1541_v55 = vmul.f32 %v2820_v16, %v1540_v10  ;;  %1838 = vmatpush.bf16.msra.mxu2 %v2661_v29 }
 0x54d   : > { %v1522_v7 = vadd.f32 %v2818_v6, %v1521_v42  ;;  %v3802_v42 = vld [vmem:[#allocation20_spill] sm:$0xff] }
 0x54e   : > { %v1542_v34 = vadd.f32 %v2820_v16, %v1541_v55  ;;  %v703_v48 = vadd.f32 %v3802_v42, %v3436_v32 }
 0x54f   : > { %v1526_v13 = vsel %vm1525_vm2, %v2818_v6, %v1522_v7 }
 0x550   : > { %v1531_v11 = vsel %vm1528_vm3, %v1530_v1, %v1526_v13  ;;  %v1546_v5 = vsel %vm1545_vm6, %v2820_v16, %v1542_v34  ;;  %v2867_v16 = vld [vmem:[%s3772_s5] ss:$0 sm:$0xff]  ;;  %vm2190_vm3 = vcmask 1041409   ;;  %vm2196_vm6 = vcmask 1044484  }
 0x551   : > { %v1554_v24 = vmul.f32 %v1553_v27, %v1531_v11  ;;  %v1551_v30 = vsel %vm1548_vm7, %v1550_v15, %v1546_v5  ;;  %v2660_v27 = vld [vmem:[#allocation11 + $0x8] sm:$0xff]  ;;  %vm2198_vm7 = vcmask 1045509  }
 0x552   : > { %v1557_v59 = vsub.f32 1.0, %v1551_v30  ;;  %v1559_v2 = vmul.f32 %v1551_v30, %v1464_v43  ;;  %1839 = vmatpush.bf16.msra.mxu2 %v2660_v27 }
 0x553   : > { %v1555_v47 = vadd.f32 %v1554_v24, %v3799_v36  ;;  %v2659_v24 = vld [vmem:[#allocation11] sm:$0xff] }
 0x555   : > { %2821 = vtanh.f32 %v1555_v47 }
 0x556   : > { %1840 = vmatpush.bf16.msra.mxu2 %v2659_v24 }
 0x55b   : > { %v2822_v45 = vpop.eup %2821 }
 0x55c   : > { %v1558_v56 = vmul.f32 %v2822_v45, %v1557_v59  ;;  %v3075_v59 = vmov 1983009808  }
 0x55d   : > { %v1672_v45 = vunpack.c.l.s4 %v3075_v59 }
 0x55e   : > { %v3635_v52 = vadd.f32 %v1559_v2, %v1558_v56  ;;  %v1662_v2 = vld [vmem:[#allocation3 + $0x8] sm:$0xf] }
 0x560   : > { %v1561_v9 = vpack.c.bf16 %v3635_v52, %v3635_v52 }
 0x562   : > { %1563 = vst [vmem:[#allocation3 + $0x18] sm:$0xf] %v1561_v9  ;;  %1578 = vmatmul.bf16.vlgmr.msra.gmra.mxu3 %v1561_v9  ;;  %1591 = vmatmul.bf16.vlgmr.msra.gmra.mxu0 %v1561_v9 }
 0x563   : > { %1604 = vmatmul.bf16.vlgmr.msra.gmra.mxu1 %v1561_v9  ;;  %v1664_v9 = vld [vmem:[#allocation3 + $0x10] sm:$0xf] }
 0x569   : > { %v1666_v47 = vld [vmem:[#allocation3 + $0x18] sm:$0xf] }
 0x56a   : > { %v1675_v30 = vrot.slane %v1666_v47, 4 }
 0x56c   : > { %v1676_v14 = vsel %vm1669_vm0, %v1675_v30, %v1662_v2 }
 0x5df   : > { %v1592_v35 = vpop.f32.mrf.mxu0 }
 0x5e0   : > { %v1629_v60 = vadd.f32 %v1592_v35, %v674_v28  ;;  %v1605_v4 = vpop.f32.mrf.mxu1  ;;  %v1673_v28 = vunpack.c.0.s8 %v1672_v45  ;;  %v1668_v35 = vrot.slane %v1664_v9, 4 }
 0x5e1   : > { %v1649_v38 = vadd.f32 %v2867_v16, %v1605_v4 }
 0x5e2   : > { %v2571_v3 = vmul.f32 -1.442695, %v1629_v60  ;;  %v1665_v60 = vld [vmem:[#allocation3 + $0x14] sm:$0xf]  ;;  %v1680_v4 = vperm.slane %v1676_v14, %v1673_v28 }
 0x5e4   : > { %2823 = vpow2.f32 %v2571_v3  ;;  %v1660_v3 = vld [vmem:[#allocation3] sm:$0xf] }
 0x5e5   : > { %v1579_v25 = vpop.f32.mrf.mxu3 }
 0x5e6   : > { %v1609_v63 = vadd.f32 %v1579_v25, %v3801_v62  ;;  %v1670_v25 = vsel %vm1669_vm0, %v1668_v35, %v1660_v3  ;;  %v1863_v3 = vld [vmem:[%s3254_s2 + $0x4] sm:$0xf] }
 0x5e7   : > { %v1594_v18 = vpop.f32.mrf.mxu0 }
 0x5e8   : > { %v2570_v0 = vmul.f32 -1.442695, %v1609_v63  ;;  %v1607_v22 = vpop.f32.mrf.mxu1  ;;  %v1681_v63 = vrot.slane %v1680_v4, 4  ;;  %v3076_v18 = vmov 1934713408  }
 0x5ea   : > { %v2824_v40 = vpop.eup %2823  ;;  %2825 = vpow2.f32 %v2570_v0  ;;  %v1686_v0 = vunpack.c.l.s4 %v3076_v18 }
 0x5eb   : > { %v1633_v54 = vadd.f32 1.0, %v2824_v40  ;;  %v1661_v40 = vld [vmem:[#allocation3 + $0x4] sm:$0xf] }
 0x5ec   : > { %v1687_v37 = vunpack.c.0.s8 %v1686_v0 }
 0x5ed   : > { %v1581_v51 = vpop.f32.mrf.mxu3  ;;  %2827 = vrcp.f32 %v1633_v54  ;;  %v1645_v55 = vand.u32 2147483648, %v1633_v54  ;;  %vm1639_vm13 = vweird.f32 %v1633_v54  ;;  %v1643_v1 = vand.u32 2147483647, %v1633_v54 }
 0x5ee   : > { %v1674_v51 = vperm.slane %v1670_v25, %v1673_v28  ;;  %v1864_v25 = vld [vmem:[%s3254_s2 + $0x8] sm:$0xf] }
 0x5ef   : > { %v1646_v34 = vor.u32 1.1754944e-38, %v1645_v55  ;;  %vm1644_vm15 = vcmp.eq.f32.partialorder %v1643_v1, 8.507059e+37  ;;  %1911 = vmatpush.bf16.xpose.msrb.mxu0 %v1864_v25 }
 0x5f0   : > { %v2826_v43 = vpop.eup %2825  ;;  %v1683_v55 = vrot.slane %v1674_v51, 4 }
 0x5f1   : > { %v1613_v39 = vadd.f32 1.0, %v2826_v43 }
 0x5f3   : > { %2829 = vrcp.f32 %v1613_v39  ;;  %v2828_v57 = vpop.eup %2827  ;;  %v1625_v8 = vand.u32 2147483648, %v1613_v39  ;;  %v1623_v41 = vand.u32 2147483647, %v1613_v39  ;;  %vm1619_vm9 = vweird.f32 %v1613_v39 }
 0x5f4   : > { %v1635_v61 = vmul.f32 %v2828_v57, %v1633_v54  ;;  %vm1640_vm12 = vweird.f32 %v2828_v57  ;;  %v1663_v54 = vld [vmem:[#allocation3 + $0xc] sm:$0xf] }
 0x5f5   : > { %v1626_v6 = vor.u32 1.1754944e-38, %v1625_v8  ;;  %vm1624_vm11 = vcmp.eq.f32.partialorder %v1623_v41, 8.507059e+37  ;;  %vm1641_vm14 = vmor %vm1639_vm13, %vm1640_vm12 }
 0x5f6   : > { %v1636_v23 = vsub.f32 1.0, %v1635_v61 }
 0x5f8   : > { %v1637_v50 = vmul.f32 %v2828_v57, %v1636_v23 }
 0x5f9   : > { %v2830_v19 = vpop.eup %2829 }
 0x5fa   : > { %v1615_v33 = vmul.f32 %v2830_v19, %v1613_v39  ;;  %vm1620_vm8 = vweird.f32 %v2830_v19  ;;  %v1638_v10 = vadd.f32 %v2828_v57, %v1637_v50  ;;  %v1682_v39 = vsel %vm1669_vm0, %v1681_v63, %v1674_v51 }
 0x5fb   : > { %vm1621_vm10 = vmor %vm1619_vm9, %vm1620_vm8  ;;  %vm2200_vm8 = vcmask 1046534   ;;  %vm2202_vm9 = vcmask 1047559  }
 0x5fc   : > { %v1616_v58 = vsub.f32 1.0, %v1615_v33  ;;  %v1642_v11 = vsel %vm1641_vm14, %v2828_v57, %v1638_v10 }
 0x5fd   : > { %v1647_v17 = vsel %vm1644_vm15, %v1646_v34, %v1642_v11 }
 0x5fe   : > { %v1617_v53 = vmul.f32 %v2830_v19, %v1616_v58  ;;  %v1653_v12 = vsub.f32 1.0, %v1647_v17  ;;  %v1655_v32 = vmul.f32 %v1647_v17, %v3635_v52  ;;  %v1697_v52 = vrot.slane %v1665_v60, 4  ;;  %v3659_v17 = vld [vmem:[%s3254_s2] sm:$0xf] }
 0x5ff   : > { %1885 = vmatpush.bf16.xpose.msrb.mxu3 %v3659_v17 }
 0x600   : > { %v1618_v21 = vadd.f32 %v2830_v19, %v1617_v53  ;;  %v1698_v43 = vsel %vm1669_vm0, %v1697_v52, %v1661_v40  ;;  %v1865_v52 = vld [vmem:[%s3254_s2 + $0xc] sm:$0xf]  ;;  %v1867_v40 = vld [vmem:[%s3254_s2 + $0x14] sm:$0xf] }
 0x601   : > { %v1702_v20 = vperm.slane %v1698_v43, %v1673_v28  ;;  %1924 = vmatpush.bf16.xpose.msrb.mxu1 %v1865_v52  ;;  %1950 = vmatpush.bf16.xpose.msra.mxu0 %v1867_v40 }
 0x602   : > { %v1622_v44 = vsel %vm1621_vm10, %v2830_v19, %v1618_v21  ;;  %v1688_v19 = vperm.slane %v1682_v39, %v1687_v37  ;;  %v1868_v39 = vld [vmem:[%s3254_s2 + $0x18] sm:$0xf]  ;;  %vm2205_vm10 = vcmask 7168  }
 0x603   : > { %v1627_v26 = vsel %vm1624_vm11, %v1626_v6, %v1622_v44  ;;  %v1711_v42 = vrot.slane %v1702_v20, 4 }
 0x604   : > { %v1650_v7 = vmul.f32 %v1649_v38, %v1627_v26  ;;  %v1728_v58 = vshrl.u32 %v1688_v19, 16  ;;  %v1693_v21 = vrot.slane %v1688_v19, 4 }
 0x606   : > { %v1651_v13 = vadd.f32 %v1650_v7, %v703_v48  ;;  %v1694_v38 = vsel %vm1669_vm0, 0, %v1693_v21 }
 0x607   : > { %v1734_v29 = vshrl.u32 %v1694_v38, 16  ;;  %1898 = vmatpush.bf16.xpose.msra.mxu3 %v1863_v3 }
 0x608   : > { %2831 = vtanh.f32 %v1651_v13  ;;  %v1684_v13 = vsel %vm1669_vm0, %v1680_v4, %v1683_v55 }
 0x609   : > { %v1692_v34 = vperm.slane %v1684_v13, %v1687_v37  ;;  %1963 = vmatpush.bf16.xpose.msra.mxu1 %v1868_v39 }
 0x60b   : > { %v1695_v30 = vrot.slane %v1692_v34, 4 }
 0x60e   : > { %v2832_v36 = vpop.eup %2831 }
 0x60f   : > { %v1654_v5 = vmul.f32 %v2832_v36, %v1653_v12  ;;  %v1740_v12 = vshrl.u32 %v1692_v34, 16 }
 0x611   : > { %v1656_v15 = vadd.f32 %v1655_v32, %v1654_v5 }
 0x613   : > { %v1657_v56 = vpack.c.bf16 %v1656_v15, %v1656_v15 }
 0x615   : > { %1659 = vst [vmem:[#allocation3 + $0x1c] sm:$0xf] %v1657_v56  ;;  %v1696_v56 = vsel %vm1669_vm0, 0, %v1695_v30 }
 0x616   : > { %v1746_v9 = vshrl.u32 %v1696_v56, 16 }
 0x61c   : > { %v1667_v62 = vld [vmem:[#allocation3 + $0x1c] sm:$0xf] }
 0x61d   : > { %v1703_v22 = vrot.slane %v1667_v62, 4  ;;  %v2752_v62 = vld [vmem:[%s3774_s7] ss:$0 sm:$0xff] }
 0x61f   : > { %v1704_v31 = vsel %vm1669_vm0, %v1703_v22, %v1663_v54  ;;  %v1866_v22 = vld [vmem:[%s3254_s2 + $0x10] sm:$0xf]  ;;  %v2080_v54 = vunpack.c.l.bf16 %v1863_v3 }
 0x620   : > { %v1708_v57 = vperm.slane %v1704_v31, %v1673_v28 }
 0x622   : > { %v1709_v61 = vrot.slane %v1708_v57, 4  ;;  %v1712_v7 = vsel %vm1669_vm0, %v1708_v57, %v1711_v42  ;;  %v2081_v57 = vunpack.c.l.bf16 %v1864_v25  ;;  %v2085_v42 = vunpack.c.l.bf16 %v1868_v39 }
 0x623   : > { %v1720_v11 = vperm.slane %v1712_v7, %v1687_v37 }
 0x624   : > { %v1710_v33 = vsel %vm1669_vm0, %v1709_v61, %v1702_v20 }
 0x625   : > { %v1716_v46 = vperm.slane %v1710_v33, %v1687_v37  ;;  %v1741_v24 = vshrl.u32 %v1720_v11, 16  ;;  %v1739_v47 = vpack.i.b16 %v1720_v11, %v1692_v34  ;;  %v1723_v5 = vrot.slane %v1720_v11, 4  ;;  %v1869_v33 = vld [vmem:[%s3254_s2 + $0x1c] sm:$0xf] }
 0x626   : > { %v2086_v13 = vunpack.c.l.bf16 %v1869_v33 }
 0x627   : > { %v1727_v23 = vpack.i.b16 %v1716_v46, %v1688_v19  ;;  %v1729_v8 = vshrl.u32 %v1716_v46, 16  ;;  %v1721_v41 = vrot.slane %v1716_v46, 4  ;;  %v1742_v36 = vpack.i.b16 %v1741_v24, %v1740_v12 }
 0x628   : > { %v1773_v15 = vunpack.c.l.b16 %v1739_v47  ;;  %v1724_v45 = vsel %vm1669_vm0, 0, %v1723_v5 }
 0x629   : > { %v1730_v53 = vpack.i.b16 %v1729_v8, %v1728_v58  ;;  %v1769_v49 = vunpack.c.l.b16 %v1727_v23  ;;  %v1722_v16 = vsel %vm1669_vm0, 0, %v1721_v41  ;;  %v1774_v32 = vunpack.c.l.b16 %v1742_v36 }
 0x62a   : > { %v1735_v44 = vshrl.u32 %v1722_v16, 16  ;;  %v1733_v26 = vpack.i.b16 %v1722_v16, %v1694_v38  ;;  %v1747_v2 = vshrl.u32 %v1724_v45, 16  ;;  %v1745_v28 = vpack.i.b16 %v1724_v45, %v1696_v56 }
 0x62b   : > { %v1770_v50 = vunpack.c.l.b16 %v1730_v53  ;;  %v1779_v59 = vpack.c.b16 %v1774_v32, %v1773_v15  ;;  %v2082_v23 = vunpack.c.l.bf16 %v1865_v52  ;;  %v2084_v38 = vunpack.c.l.bf16 %v1867_v40 }
 0x62c   : > { %v1736_v10 = vpack.i.b16 %v1735_v44, %v1734_v29  ;;  %v1771_v1 = vunpack.c.l.b16 %v1733_v26  ;;  %v1748_v14 = vpack.i.b16 %v1747_v2, %v1746_v9  ;;  %v1775_v60 = vunpack.c.l.b16 %v1745_v28 }
 0x62d   : > { %v1777_v6 = vpack.c.b16 %v1770_v50, %v1769_v49  ;;  %v2083_v49 = vunpack.c.l.bf16 %v1866_v22 }
 0x62e   : > { %v1772_v48 = vunpack.c.l.b16 %v1736_v10  ;;  %v1776_v35 = vunpack.c.l.b16 %v1748_v14 }
 0x62f   : > { %1841 = vmatmul.bf16.vlgmr.msra.gmra.mxu2 %v1777_v6 }
 0x630   : > { %v1778_v27 = vpack.c.b16 %v1772_v48, %v1771_v1  ;;  %v1780_v4 = vpack.c.b16 %v1776_v35, %v1775_v60 }
 0x63f   : > { %1846 = vmatmul.bf16.gmra.mxu2 %v1778_v27 }
 0x64f   : > { %1851 = vmatmul.bf16.gmra.mxu2 %v1779_v59 }
 0x65f   : > { %1856 = vmatmul.bf16.gmra.mxu2 %v1780_v4 }
 0x6b2   : > { %v1842_v63 = vpop.f32.mrf.mxu2 }
 0x6b3   : > { %v3670_v18 = vadd.f32 %v2752_v62, %v1842_v63 }
 0x6b5   : > { %v1870_v0 = vpack.c.bf16 %v3670_v18, %v3670_v18 }
 0x6b7   : > { %1886 = vmatmul.bf16.vlgmr.msrb.gmra.mxu3 %v1870_v0 }
 0x6b8   : > { %1937 = vmatpush.bf16.xpose.msrb.mxu3 %v1866_v22  ;;  %v2079_v22 = vunpack.c.l.bf16 %v3659_v17 }
 0x6ba   : > { %v1844_v51 = vpop.f32.mrf.mxu2 }
 0x6bb   : > { %v1845_v43 = vadd.f32 %v2752_v62, %v1844_v51 }
 0x6bd   : > { %v3676_v31 = vmul.f32 %v2080_v54, %v1845_v43  ;;  %v1871_v61 = vpack.c.bf16 %v1845_v43, %v1845_v43  ;;  %v2087_v54 = vmul.f32 %v2079_v22, %v3670_v18 }
 0x6c2   : > { %v1847_v37 = vpop.f32.mrf.mxu2 }
 0x6c3   : > { %v1848_v20 = vadd.f32 %v2752_v62, %v1847_v37 }
 0x6c5   : > { %v1872_v19 = vpack.c.bf16 %v1848_v20, %v1848_v20  ;;  %v3680_v46 = vmul.f32 %v2081_v57, %v1848_v20 }
 0x6c7   : > { %1899 = vmatmul.bf16.vlgmr.msra.gmra.mxu3 %v1871_v61  ;;  %1912 = vmatmul.bf16.vlgmr.msrb.gmra.mxu0 %v1872_v19 }
 0x6c8   : > { %1976 = vmatpush.bf16.xpose.msra.mxu3 %v1869_v33 }
 0x6ca   : > { %v1849_v58 = vpop.f32.mrf.mxu2 }
 0x6cb   : > { %v1850_v8 = vadd.f32 %v2752_v62, %v1849_v58 }
 0x6cd   : > { %v1873_v53 = vpack.c.bf16 %v1850_v8, %v1850_v8  ;;  %v3682_v41 = vmul.f32 %v2082_v23, %v1850_v8 }
 0x6cf   : > { %1925 = vmatmul.bf16.vlgmr.msrb.gmra.mxu1 %v1873_v53 }
 0x6d2   : > { %v1852_v50 = vpop.f32.mrf.mxu2 }
 0x6d3   : > { %v1853_v21 = vadd.f32 %v2752_v62, %v1852_v50 }
 0x6d5   : > { %v1874_v6 = vpack.c.bf16 %v1853_v21, %v1853_v21  ;;  %v3684_v16 = vmul.f32 %v2083_v49, %v1853_v21 }
 0x6d7   : > { %1938 = vmatmul.bf16.vlgmr.msrb.gmra.mxu3 %v1874_v6 }
 0x6da   : > { %v1854_v44 = vpop.f32.mrf.mxu2 }
 0x6db   : > { %v1855_v29 = vadd.f32 %v2752_v62, %v1854_v44 }
 0x6dd   : > { %v1875_v10 = vpack.c.bf16 %v1855_v29, %v1855_v29  ;;  %v3686_v26 = vmul.f32 %v2084_v38, %v1855_v29 }
 0x6df   : > { %1951 = vmatmul.bf16.vlgmr.msra.gmra.mxu0 %v1875_v10 }
 0x6e2   : > { %v1857_v48 = vpop.f32.mrf.mxu2 }
 0x6e3   : > { %v1858_v55 = vadd.f32 %v2752_v62, %v1857_v48 }
 0x6e5   : > { %v1876_v7 = vpack.c.bf16 %v1858_v55, %v1858_v55  ;;  %v3688_v1 = vmul.f32 %v2085_v42, %v1858_v55 }
 0x6e7   : > { %1964 = vmatmul.bf16.vlgmr.msra.gmra.mxu1 %v1876_v7 }
 0x6ea   : > { %v1859_v27 = vpop.f32.mrf.mxu2 }
 0x6eb   : > { %v1860_v11 = vadd.f32 %v2752_v62, %v1859_v27 }
 0x6ed   : > { %v1877_v34 = vpack.c.bf16 %v1860_v11, %v1860_v11  ;;  %v3690_v24 = vmul.f32 %v2086_v13, %v1860_v11 }
 0x6ef   : > { %1977 = vmatmul.bf16.vlgmr.msra.gmra.mxu3 %v1877_v34 }
 0x73a   : > { %v1887_v12 = vpop.f32.mrf.mxu3 }
 0x73b   : > { %v1983_v36 = vsel %vm1982_vm1, %v1887_v12, -inf }
 0x73c   : > { %1984 = vmax.xlane.f32.xlu0 %v1983_v36 }
 0x742   : > { %v1889_v47 = vpop.f32.mrf.mxu3 }
 0x744   : > { %v1913_v32 = vpop.f32.mrf.mxu0 }
 0x745   : > { %v1989_v5 = vsel %vm1982_vm1, %v1913_v32, -inf }
 0x746   : > { %1990 = vmax.xlane.f32.xlu1 %v1989_v5 }
 0x74a   : > { %v1900_v15 = vpop.f32.mrf.mxu3 }
 0x74b   : > { %v1986_v30 = vsel %vm1982_vm1, %v1900_v15, -inf }
 0x74c   : > { %1987 = vmax.xlane.f32.xlu0 %v1986_v30  ;;  %v1915_v59 = vpop.f32.mrf.mxu0  ;;  %v1926_v45 = vpop.f32.mrf.mxu1 }
 0x74d   : > { %v1992_v56 = vsel %vm1982_vm1, %v1926_v45, -inf }
 0x74e   : > { %1993 = vmax.xlane.f32.xlu1 %v1992_v56 }
 0x752   : > { %v1902_v2 = vpop.f32.mrf.mxu3 }
 0x754   : > { %v1928_v9 = vpop.f32.mrf.mxu1 }
 0x75a   : > { %v1939_v14 = vpop.f32.mrf.mxu3 }
 0x75b   : > { %v1995_v28 = vsel %vm1982_vm1, %v1939_v14, -inf }
 0x75c   : > { %1996 = vmax.xlane.f32.xlu2 %v1995_v28  ;;  %v1952_v35 = vpop.f32.mrf.mxu0 }
 0x75d   : > { %v1998_v4 = vsel %vm1982_vm1, %v1952_v35, -inf }
 0x762   : > { %v1941_v60 = vpop.f32.mrf.mxu3 }
 0x764   : > { %v1965_v3 = vpop.f32.mrf.mxu1  ;;  %1999 = vmax.xlane.f32.xlu2 %v1998_v4  ;;  %v1954_v25 = vpop.f32.mrf.mxu0 }
 0x765   : > { %v2001_v52 = vsel %vm1982_vm1, %v1965_v3, -inf }
 0x766   : > { %2002 = vmax.xlane.f32.xlu0 %v2001_v52 }
 0x76c   : > { %v1967_v62 = vpop.f32.mrf.mxu1  ;;  %2097 = vadd.xlane.f32.xlu2 %v3676_v31 }
 0x76d   : > { %v3077_v62 = vmov 8.0  }
 0x772   : > { %v1978_v63 = vpop.f32.mrf.mxu3 }
 0x773   : > { %v2004_v0 = vsel %vm1982_vm1, %v1978_v63, -inf }
 0x774   : > { %2005 = vmax.xlane.f32.xlu1 %v2004_v0 }
 0x77a   : > { %v1980_v40 = vpop.f32.mrf.mxu3 }
 0x77c   : > { %2095 = vadd.xlane.f32.xlu1 %v2087_v54 }
 0x7af   : > { %v3703_v51 = vpop.xlane.xlu0 %1984 }
 0x7b0   : > { %v2007_v43 = vsub.f32 %v1887_v12, %v3703_v51 }
 0x7b2   : > { %v2015_v39 = vmul.f32 1.442695, %v2007_v43 }
 0x7b4   : > { %2833 = vpow2.f32 %v2015_v39 }
 0x7b9   : > { %v3706_v57 = vpop.xlane.xlu1 %1990 }
 0x7ba   : > { %v2834_v37 = vpop.eup %2833  ;;  %v2009_v31 = vsub.f32 %v1913_v32, %v3706_v57 }
 0x7bb   : > { %v2031_v20 = vsel %vm1982_vm1, %v2834_v37, 0.0 }
 0x7bc   : > { %v2019_v61 = vmul.f32 1.442695, %v2009_v31  ;;  %2032 = vadd.xlane.f32.xlu2 %v2031_v20 }
 0x7be   : > { %2835 = vpow2.f32 %v2019_v61 }
 0x7bf   : > { %v3710_v17 = vpop.xlane.xlu0 %1987 }
 0x7c0   : > { %v2008_v18 = vsub.f32 %v1900_v15, %v3710_v17 }
 0x7c1   : > { %v3713_v19 = vpop.xlane.xlu1 %1993 }
 0x7c2   : > { %v2017_v33 = vmul.f32 1.442695, %v2008_v18  ;;  %v2010_v23 = vsub.f32 %v1926_v45, %v3713_v19 }
 0x7c4   : > { %v2836_v58 = vpop.eup %2835  ;;  %2837 = vpow2.f32 %v2017_v33  ;;  %v2021_v8 = vmul.f32 1.442695, %v2010_v23 }
 0x7c5   : > { %v2037_v53 = vsel %vm1982_vm1, %v2836_v58, 0.0 }
 0x7c6   : > { %2839 = vpow2.f32 %v2021_v8  ;;  %2038 = vadd.xlane.f32.xlu1 %v2037_v53 }
 0x7ca   : > { %v2838_v49 = vpop.eup %2837 }
 0x7cb   : > { %v2034_v50 = vsel %vm1982_vm1, %v2838_v49, 0.0 }
 0x7cc   : > { %v2840_v21 = vpop.eup %2839  ;;  %2035 = vadd.xlane.f32.xlu0 %v2034_v50 }
 0x7cd   : > { %v2040_v6 = vsel %vm1982_vm1, %v2840_v21, 0.0 }
 0x7ce   : > { %2041 = vadd.xlane.f32.xlu2 %v2040_v6 }
 0x7cf   : > { %v3719_v38 = vpop.xlane.xlu2 %1996 }
 0x7d0   : > { %v2011_v44 = vsub.f32 %v1939_v14, %v3719_v38 }
 0x7d2   : > { %v2023_v29 = vmul.f32 1.442695, %v2011_v44 }
 0x7d4   : > { %2841 = vpow2.f32 %v2023_v29 }
 0x7d7   : > { %v3722_v10 = vpop.xlane.xlu2 %1999 }
 0x7d8   : > { %v2012_v42 = vsub.f32 %v1952_v35, %v3722_v10 }
 0x7d9   : > { %v3725_v48 = vpop.xlane.xlu0 %2002 }
 0x7da   : > { %v2842_v55 = vpop.eup %2841  ;;  %v2025_v7 = vmul.f32 1.442695, %v2012_v42  ;;  %v2013_v13 = vsub.f32 %v1965_v3, %v3725_v48 }
 0x7db   : > { %v2043_v27 = vsel %vm1982_vm1, %v2842_v55, 0.0 }
 0x7dc   : > { %2843 = vpow2.f32 %v2025_v7  ;;  %v2027_v11 = vmul.f32 1.442695, %v2013_v13  ;;  %2044 = vadd.xlane.f32.xlu0 %v2043_v27 }
 0x7de   : > { %2845 = vpow2.f32 %v2027_v11 }
 0x7df   : > { %v2098_v45 = vpop.xlane.xlu2 %2097 }
 0x7e2   : > { %v2844_v34 = vpop.eup %2843 }
 0x7e3   : > { %v2046_v12 = vsel %vm1982_vm1, %v2844_v34, 0.0 }
 0x7e4   : > { %v2846_v36 = vpop.eup %2845  ;;  %2047 = vadd.xlane.f32.xlu1 %v2046_v12 }
 0x7e5   : > { %v2049_v47 = vsel %vm1982_vm1, %v2846_v36, 0.0 }
 0x7e6   : > { %2050 = vadd.xlane.f32.xlu2 %v2049_v47 }
 0x7e7   : > { %v3731_v32 = vpop.xlane.xlu1 %2005 }
 0x7e8   : > { %v2014_v5 = vsub.f32 %v1978_v63, %v3731_v32 }
 0x7ea   : > { %v2029_v15 = vmul.f32 1.442695, %v2014_v5 }
 0x7ec   : > { %2847 = vpow2.f32 %v2029_v15  ;;  %2101 = vadd.xlane.f32.xlu1 %v3682_v41 }
 0x7ee   : > { %2103 = vadd.xlane.f32.xlu2 %v3684_v16 }
 0x7ef   : > { %v2096_v56 = vpop.xlane.xlu1 %2095 }
 0x7f2   : > { %v2848_v30 = vpop.eup %2847 }
 0x7f3   : > { %v2052_v59 = vsel %vm1982_vm1, %v2848_v30, 0.0 }
 0x7f4   : > { %2053 = vadd.xlane.f32.xlu0 %v2052_v59  ;;  %2107 = vadd.xlane.f32.xlu1 %v3688_v1 }
 0x7f6   : > { %2109 = vadd.xlane.f32.xlu2 %v3690_v24 }
 0x7fc   : > { %2099 = vadd.xlane.f32.xlu0 %v3680_v46 }
 0x804   : > { %2105 = vadd.xlane.f32.xlu0 %v3686_v26 }
 0x82f   : > { %v2033_v2 = vpop.xlane.xlu2 %2032 }
 0x839   : > { %v2039_v14 = vpop.xlane.xlu1 %2038 }
 0x83f   : > { %v2036_v9 = vpop.xlane.xlu0 %2035 }
 0x840   : > { %2849 = vlog2.f32 %v2036_v9 }
 0x841   : > { %2851 = vlog2.f32 %v2033_v2  ;;  %v2042_v41 = vpop.xlane.xlu2 %2041 }
 0x842   : > { %2853 = vlog2.f32 %v2042_v41 }
 0x846   : > { %v2850_v16 = vpop.eup %2849 }
 0x847   : > { %v2852_v28 = vpop.eup %2851  ;;  %v2058_v1 = vmul.f32 0.6931472, %v2850_v16 }
 0x848   : > { %v2056_v4 = vmul.f32 0.6931472, %v2852_v28  ;;  %v2854_v26 = vpop.eup %2853 }
 0x849   : > { %v2072_v46 = vadd.f32 %v2058_v1, %v3710_v17  ;;  %v2062_v0 = vmul.f32 0.6931472, %v2854_v26 }
 0x84a   : > { %v2071_v3 = vadd.f32 %v2056_v4, %v3703_v51 }
 0x84b   : > { %v2112_v63 = vsub.f32 %v2072_v46, %v2098_v45  ;;  %v2074_v39 = vadd.f32 %v2062_v0, %v3713_v19 }
 0x84c   : > { %v2111_v22 = vsub.f32 %v2071_v3, %v2096_v56 }
 0x84d   : > { %v2125_v43 = vrot.slane %v2112_v63, 4 }
 0x84e   : > { %v2119_v37 = vrot.slane %v2111_v22, 4 }
 0x84f   : > { %v2045_v35 = vpop.xlane.xlu0 %2044  ;;  %v2126_v23 = vadd.f32 %v2125_v43, %v2112_v63 }
 0x850   : > { %2855 = vlog2.f32 %v2045_v35  ;;  %v2120_v8 = vadd.f32 %v2119_v37, %v2111_v22 }
 0x851   : > { %v2127_v44 = vrot.slane %v2126_v23, 2 }
 0x852   : > { %v2121_v29 = vrot.slane %v2120_v8, 2 }
 0x853   : > { %v2128_v36 = vadd.f32 %v2127_v44, %v2126_v23 }
 0x854   : > { %v2122_v5 = vadd.f32 %v2121_v29, %v2120_v8 }
 0x855   : > { %v2129_v41 = vrot.slane %v2128_v36, 1 }
 0x856   : > { %v2856_v52 = vpop.eup %2855 }
 0x857   : > { %v2048_v60 = vpop.xlane.xlu1 %2047  ;;  %v2064_v54 = vmul.f32 0.6931472, %v2856_v52  ;;  %v2130_v3 = vadd.f32 %v2129_v41, %v2128_v36 }
 0x859   : > { %v2051_v24 = vpop.xlane.xlu2 %2050  ;;  %v2075_v51 = vadd.f32 %v2064_v54, %v3719_v38 }
 0x85a   : > { %2857 = vlog2.f32 %v2051_v24 }
 0x85b   : > { %2859 = vrcp.f32 %v3077_v62 }
 0x85c   : > { %2861 = vlog2.f32 %v2039_v14 }
 0x85f   : > { %v2102_v25 = vpop.xlane.xlu1 %2101 }
 0x860   : > { %v2858_v40 = vpop.eup %2857  ;;  %v2114_v61 = vsub.f32 %v2074_v39, %v2102_v25 }
 0x861   : > { %v2068_v31 = vmul.f32 0.6931472, %v2858_v40  ;;  %v2860_v20 = vpop.eup %2859  ;;  %v2104_v17 = vpop.xlane.xlu2 %2103 }
 0x862   : > { %v2862_v18 = vpop.eup %2861  ;;  %v2115_v53 = vsub.f32 %v2075_v51, %v2104_v17  ;;  %v2168_v50 = vmul.f32 8.0, %v2860_v20  ;;  %v2137_v19 = vrot.slane %v2114_v61, 4  ;;  %vm2172_vm2 = vweird.f32 %v2860_v20 }
 0x863   : > { %v2077_v49 = vadd.f32 %v2068_v31, %v3725_v48  ;;  %v2060_v21 = vmul.f32 0.6931472, %v2862_v18 }
 0x864   : > { %v2143_v42 = vrot.slane %v2115_v53, 4  ;;  %v2169_v7 = vsub.f32 1.0, %v2168_v50  ;;  %v2138_v13 = vadd.f32 %v2137_v19, %v2114_v61 }
 0x865   : > { %v2073_v38 = vadd.f32 %v2060_v21, %v3706_v57  ;;  %v2123_v57 = vrot.slane %v2122_v5, 1 }
 0x866   : > { %v2144_v48 = vadd.f32 %v2143_v42, %v2115_v53  ;;  %v2170_v30 = vmul.f32 %v2860_v20, %v2169_v7  ;;  %v2139_v45 = vrot.slane %v2138_v13, 2 }
 0x867   : > { %v2054_v33 = vpop.xlane.xlu0 %2053  ;;  %v2108_v58 = vpop.xlane.xlu1 %2107  ;;  %v2124_v62 = vadd.f32 %v2123_v57, %v2122_v5 }
 0x868   : > { %2863 = vlog2.f32 %v2054_v33  ;;  %v2117_v6 = vsub.f32 %v2077_v49, %v2108_v58  ;;  %v2145_v28 = vrot.slane %v2144_v48, 2  ;;  %v2140_v1 = vadd.f32 %v2139_v45, %v2138_v13 }
 0x869   : > { %2865 = vlog2.f32 %v2048_v60  ;;  %v2110_v56 = vpop.xlane.xlu2 %2109  ;;  %v2171_v60 = vadd.f32 %v2860_v20, %v2170_v30 }
 0x86a   : > { %v2155_v34 = vrot.slane %v2117_v6, 4  ;;  %v2146_v63 = vadd.f32 %v2145_v28, %v2144_v48  ;;  %v2141_v40 = vrot.slane %v2140_v1, 1 }
 0x86b   : > { %v2173_v22 = vsel %vm2172_vm2, %v2860_v20, %v2171_v60 }
 0x86c   : > { %v2156_v9 = vadd.f32 %v2155_v34, %v2117_v6  ;;  %v2175_v37 = vmul.f32 %v2173_v22, %v2130_v3  ;;  %v2174_v17 = vmul.f32 %v2173_v22, %v2124_v62  ;;  %v2147_v18 = vrot.slane %v2146_v63, 1 }
 0x86d   : > { %v2142_v51 = vadd.f32 %v2141_v40, %v2140_v1 }
 0x86e   : > { %v2864_v55 = vpop.eup %2863  ;;  %v2157_v46 = vrot.slane %v2156_v9, 2  ;;  %v2191_v20 = vsel %vm2190_vm3, %v2175_v37, %v2174_v17  ;;  %v2148_v49 = vadd.f32 %v2147_v18, %v2146_v63 }
 0x86f   : > { %v2866_v27 = vpop.eup %2865  ;;  %v2070_v11 = vmul.f32 0.6931472, %v2864_v55  ;;  %v2100_v12 = vpop.xlane.xlu0 %2099  ;;  %v2177_v21 = vmul.f32 %v2173_v22, %v2142_v51 }
 0x870   : > { %v2113_v47 = vsub.f32 %v2073_v38, %v2100_v12  ;;  %v2066_v59 = vmul.f32 0.6931472, %v2866_v27  ;;  %v2158_v39 = vadd.f32 %v2157_v46, %v2156_v9  ;;  %v2178_v55 = vmul.f32 %v2173_v22, %v2148_v49 }
 0x871   : > { %v2078_v15 = vadd.f32 %v2070_v11, %v3731_v32 }
 0x872   : > { %v2131_v2 = vrot.slane %v2113_v47, 4  ;;  %v2076_v24 = vadd.f32 %v2066_v59, %v3722_v10  ;;  %v2159_v58 = vrot.slane %v2158_v39, 1 }
 0x873   : > { %v2118_v14 = vsub.f32 %v2078_v15, %v2110_v56 }
 0x874   : > { %v2132_v16 = vadd.f32 %v2131_v2, %v2113_v47  ;;  %v2160_v6 = vadd.f32 %v2159_v58, %v2158_v39 }
 0x875   : > { %v2161_v35 = vrot.slane %v2118_v14, 4 }
 0x876   : > { %v2133_v4 = vrot.slane %v2132_v16, 2  ;;  %v2180_v13 = vmul.f32 %v2173_v22, %v2160_v6 }
 0x877   : > { %v2162_v32 = vadd.f32 %v2161_v35, %v2118_v14  ;;  %v2106_v26 = vpop.xlane.xlu0 %2105 }
 0x878   : > { %v2134_v25 = vadd.f32 %v2133_v4, %v2132_v16  ;;  %v2116_v52 = vsub.f32 %v2076_v24, %v2106_v26 }
 0x879   : > { %v2163_v0 = vrot.slane %v2162_v32, 2 }
 0x87a   : > { %v2135_v54 = vrot.slane %v2134_v25, 1  ;;  %v2149_v43 = vrot.slane %v2116_v52, 4 }
 0x87b   : > { %v2164_v31 = vadd.f32 %v2163_v0, %v2162_v32 }
 0x87c   : > { %v2136_v61 = vadd.f32 %v2135_v54, %v2134_v25  ;;  %v2150_v10 = vadd.f32 %v2149_v43, %v2116_v52 }
 0x87d   : > { %v2165_v8 = vrot.slane %v2164_v31, 1 }
 0x87e   : > { %v2176_v33 = vmul.f32 %v2173_v22, %v2136_v61  ;;  %v2151_v23 = vrot.slane %v2150_v10, 2 }
 0x87f   : > { %v2166_v44 = vadd.f32 %v2165_v8, %v2164_v31 }
 0x880   : > { %v2152_v53 = vadd.f32 %v2151_v23, %v2150_v10  ;;  %v2193_v50 = vsel %vm2192_vm4, %v2176_v33, %v2191_v20 }
 0x881   : > { %v2195_v29 = vsel %vm2194_vm5, %v2177_v21, %v2193_v50  ;;  %v2181_v27 = vmul.f32 %v2173_v22, %v2166_v44 }
 0x882   : > { %v2153_v19 = vrot.slane %v2152_v53, 1  ;;  %v2197_v38 = vsel %vm2196_vm6, %v2178_v55, %v2195_v29 }
 0x884   : > { %v2154_v42 = vadd.f32 %v2153_v19, %v2152_v53 }
 0x886   : > { %v2179_v7 = vmul.f32 %v2173_v22, %v2154_v42 }
 0x888   : > { %v2199_v11 = vsel %vm2198_vm7, %v2179_v7, %v2197_v38 }
 0x889   : > { %v2201_v34 = vsel %vm2200_vm8, %v2180_v13, %v2199_v11 }
 0x88a   : > { %v2203_v12 = vsel %vm2202_vm9, %v2181_v27, %v2201_v34 }
 0x88b   : > { %2206 = vst.msk [vmem:[%s416_s30] sm:$0xff] %vm2205_vm10, %v2203_v12 }
 0x88c PF: > { %s3803_s9 = sld [smem:[#allocation16_spill]]  ;;  %p22_p4 = scmp.ge.s32.totalorder %s3185_s16, 4  }
 0x88d   : > { %s3804_s27 = smov %s3056_s28  ;;  %s3805_s28 = smov %s3060_s29 }
 0x88e   : > { %s3807_s30 = smov %s3185_s16  ;;  %24 = sbr.rel (!%p22_p4) target bundleno = 11 (0xb), region = 132 }
 0x892   : > { %s3806_s29 = smov %s3803_s9 }
 0x893   :  { %2226 = vsyncpa [#allocation5], 1 }
 0x894   :  { %2228 = vsyncpa [#allocation5 + $0x1], 1 }
 0x895   :  { %2229 = vsyncpa [#allocation7], 1 }
 0x896   :  { %2231 = vsyncpa [#allocation7 + $0x1], 1 }
 0x897   :  { %2232 = vsyncpa [#allocation10], 1 }

</bundles_post_ra>
